<compile_context>
chip_gen: v7x
topology: tpu7x:2x2x1
jax: 0.10.0
libtpu: 0.0.40
codegen_flags: <defaults>
</compile_context>

<pallas_src>
import jax
import jax.numpy as jnp
from jax.experimental import pallas as pl
from jax.experimental.pallas import tpu as pltpu

TIME_DIM = 160           # torch.arange(0, 160) -> embedding dim 320
EMB_DIM = 2 * TIME_DIM   # 320
_MIB = 1024 * 1024


def _round_up(x, m):
    return (x + m - 1) // m * m


def _cdiv(a, b):
    return (a + b - 1) // b


def _time_freqs():
    # Matches torch.pow(10000, -arange(160)/160) in f32.
    return jnp.power(jnp.float32(10000.0),
                     -jnp.arange(TIME_DIM, dtype=jnp.float32) / jnp.float32(TIME_DIM))


def _batch_tile_cap():
    # 256-row tiles feed the 2x256^2 MXUs on v6e/v7x; 128 elsewhere (v5e 128^2).
    try:
        kind = jax.devices()[0].device_kind.lower()
    except Exception:
        return 128
    return 256 if ("v6" in kind or "v7" in kind) else 128


def _silu(h):
    # sigmoid(h) = 0.5*tanh(0.5*h) + 0.5 -> one EUP push instead of exp+add+rcp.
    return h * (0.5 * jnp.tanh(0.5 * h) + 0.5)


def bfn_kernel_fused(t_ref, theta_ref, freq_ref, phase_ref, w1_ref, wt_ref,
                     b1_ref, w2_ref, b2_ref, out_ref):
    """Collapsed-D kernel: one grid step per batch tile, all weights resident."""
    # get_time_embedding: [cos(t*f) | sin(t*f)] == cos(t*[f|f] + [0 | -pi/2])
    x = t_ref[...] * freq_ref[...] + phase_ref[...]                  # (TB, 320) f32
    emb = jnp.cos(x).astype(jnp.bfloat16)
    h = (jnp.dot(theta_ref[...], w1_ref[...], preferred_element_type=jnp.float32)
         + jnp.dot(emb, wt_ref[...], preferred_element_type=jnp.float32)
         + b1_ref[...])                                              # (TB, H) f32
    h = _silu(h)
    out = (jnp.dot(h.astype(jnp.bfloat16), w2_ref[...],
                   preferred_element_type=jnp.float32) + b2_ref[...])
    out_ref[...] = out.astype(out_ref.dtype)


def bfn_kernel_dtiled(t_ref, theta_ref, freq_ref, phase_ref, w1_ref, wt_ref,
                      b1_ref, w2_ref, b2_ref, out_ref, h_ref):
    """Fallback for large D: layer-2 tiled over output columns, hidden cached.

    Only correct while the D axis stays 'arbitrary' (innermost, starting at 0
    for every batch tile) -- a core that never executes j == 0 would read an
    uninitialized h_ref.  Do not mark / shard the D axis 'parallel'.
    """
    @pl.when(pl.program_id(1) == 0)
    def _():
        x = t_ref[...] * freq_ref[...] + phase_ref[...]
        emb = jnp.cos(x).astype(jnp.bfloat16)
        h = (jnp.dot(theta_ref[...], w1_ref[...], preferred_element_type=jnp.float32)
             + jnp.dot(emb, wt_ref[...], preferred_element_type=jnp.float32)
             + b1_ref[...])
        h_ref[...] = _silu(h).astype(jnp.bfloat16)

    out = (jnp.dot(h_ref[...], w2_ref[...], preferred_element_type=jnp.float32)
           + b2_ref[...])
    out_ref[...] = out.astype(out_ref.dtype)


def bfn_forward(theta, t, params, *, out_dtype=jnp.float32, force_d_tiling=False):
    """BFNContinuousData.forward(theta, t) -> (B, D) in out_dtype."""
    B, D = theta.shape
    H = params["w1"].shape[1]
    out_itemsize = 2 if out_dtype in (jnp.bfloat16, jnp.float16) else 4

    # ---- Tiling ---------------------------------------------------------
    Dp = _round_up(D, 128)              # lane-dense output columns (pad, never mask)
    TB_CAP = _batch_tile_cap()
    Bp = _round_up(B, 16)               # bf16 native sublane tile
    if Bp <= 16:
        TB = Bp
    else:
        # >= 2 batch tiles when possible (keeps the 2nd TensorCore busy on v7x).
        TB = min(TB_CAP, _round_up(_cdiv(Bp, 2), 16))
        Bp = _round_up(Bp, TB)

    # ---- Operand prep: pad + cast once, outside the kernel ---------------
    theta_bf = jnp.pad(theta, ((0, Bp - B), (0, Dp - D))).astype(jnp.bfloat16)
    t2 = jnp.pad(t, (0, Bp - B)).reshape(Bp, 1).astype(jnp.float32)
    w1 = jnp.pad(params["w1"], ((0, Dp - D), (0, 0))).astype(jnp.bfloat16)    # (Dp, H)
    wt = jnp.concatenate([params["wt_cos"], params["wt_sin"]],
                         axis=0).astype(jnp.bfloat16)                         # (320, H)
    w2 = jnp.pad(params["w2"], ((0, 0), (0, Dp - D))).astype(jnp.bfloat16)    # (H, Dp)
    b1 = params["b1"].reshape(1, H).astype(jnp.float32)
    b2 = jnp.pad(params["b2"].reshape(1, D), ((0, 0), (0, Dp - D))).astype(jnp.float32)

    # Hoisted time-embedding constants (no in-kernel power/iota).
    freqs = _time_freqs()
    freq_full = jnp.concatenate([freqs, freqs]).reshape(1, EMB_DIM)
    phase = jnp.concatenate(
        [jnp.zeros((TIME_DIM,), jnp.float32),
         jnp.full((TIME_DIM,), -jnp.pi / 2, jnp.float32)]).reshape(1, EMB_DIM)

    # ---- Collapsed vs. D-tiled layer-2 ------------------------------------
    def vmem_est(td, dbl_resident):
        rmult = 2 if dbl_resident else 1
        resident = rmult * (w1.size * 2 + wt.size * 2 + H * td * 2
                            + b1.size * 4 + td * 4 + 2 * EMB_DIM * 4)
        streams = 2 * (TB * Dp * 2 + TB * 4 + TB * td * out_itemsize)
        scratch = TB * H * 2 if td != Dp else 0
        temps = TB * EMB_DIM * 4 + 2 * TB * H * 4 + TB * td * 4
        return resident + streams + scratch + temps

    collapse = (not force_d_tiling) and vmem_est(Dp, True) <= 24 * _MIB
    if collapse:
        TD = Dp
    else:
        TD = next(c for c in (512, 256, 128) if Dp % c == 0)
        if force_d_tiling and TD >= Dp:
            TD = 128                      # test knob: make the D axis really iterate
    # TODO(synk): for very large D*H (w1 alone near the 64 MiB v7x VMEM ceiling)
    # the layer-1 contraction should also be tiled (3rd grid axis + f32
    # accumulator with pl.when init/finalize); only layer 2 is tiled here.

    vmem_limit = int(min(64 * _MIB, max(16 * _MIB, 2 * vmem_est(TD, True))))

    flops = 2 * Bp * H * (Dp + EMB_DIM) + 2 * Bp * H * Dp
    transcendentals = Bp * (EMB_DIM + H)                 # cos + tanh(SiLU)
    bytes_accessed = (theta_bf.size * 2 + t2.size * 4 + w1.size * 2 + wt.size * 2
                      + w2.size * 2 + b1.size * 4 + b2.size * 4 + 2 * EMB_DIM * 4
                      + Bp * Dp * out_itemsize)
    cost = pl.CostEstimate(flops=flops, transcendentals=transcendentals,
                           bytes_accessed=bytes_accessed)

    def run(single_buffer_residents):
        def res(shape):
            # Constant-index (resident) input: the default 2-deep pipeline only
            # doubles its VMEM footprint, so request a single buffer.
            if single_buffer_residents:
                return pl.BlockSpec(shape, lambda *_: (0, 0),
                                    pipeline_mode=pl.Buffered(1))
            return pl.BlockSpec(shape, lambda *_: (0, 0))

        if collapse:
            grid = (Bp // TB,)
            in_specs = [
                pl.BlockSpec((TB, 1), lambda i: (i, 0)),           # t
                pl.BlockSpec((TB, Dp), lambda i: (i, 0)),          # theta
                res((1, EMB_DIM)), res((1, EMB_DIM)),              # freq, phase
                res((Dp, H)), res((EMB_DIM, H)), res((1, H)),      # w1, wt, b1
                res((H, Dp)), res((1, Dp)),                        # w2, b2 (resident)
            ]
            out_specs = pl.BlockSpec((TB, Dp), lambda i: (i, 0))
            scratch = []
            kernel = bfn_kernel_fused
            semantics = ("parallel",)
        else:
            grid = (Bp // TB, Dp // TD)
            in_specs = [
                pl.BlockSpec((TB, 1), lambda i, j: (i, 0)),        # t
                pl.BlockSpec((TB, Dp), lambda i, j: (i, 0)),       # theta
                res((1, EMB_DIM)), res((1, EMB_DIM)),              # freq, phase
                res((Dp, H)), res((EMB_DIM, H)), res((1, H)),      # w1, wt, b1
                pl.BlockSpec((H, TD), lambda i, j: (0, j)),        # w2 (D-tiled)
                pl.BlockSpec((1, TD), lambda i, j: (0, j)),        # b2 (D-tiled)
            ]
            out_specs = pl.BlockSpec((TB, TD), lambda i, j: (i, j))
            scratch = [pltpu.VMEM((TB, H), jnp.bfloat16)]          # cached hidden
            kernel = bfn_kernel_dtiled
            semantics = ("parallel", "arbitrary")   # D axis must stay arbitrary

        return pl.pallas_call(
            kernel,
            out_shape=jax.ShapeDtypeStruct((Bp, Dp), out_dtype),
            grid_spec=pltpu.PrefetchScalarGridSpec(
                num_scalar_prefetch=0, grid=grid,
                in_specs=in_specs, out_specs=out_specs,
                scratch_shapes=scratch),
            compiler_params=pltpu.CompilerParams(
                dimension_semantics=semantics,
                vmem_limit_bytes=vmem_limit),
            cost_estimate=cost,
        )(t2, theta_bf, freq_full, phase, w1, wt, b1, w2, b2)

    try:
        out = run(True)
    except Exception:
        # pipeline_mode=pl.Buffered(1) unsupported on this jax build:
        # fall back to default double-buffered resident weights.
        out = run(False)

    return out[:B, :D]


def ref_forward(theta, t, params):
    """Pure-JAX f32 reference matching the PyTorch semantics (synthetic unet)."""
    freqs = _time_freqs()
    x = t[:, None] * freqs[None]
    t_emb = jnp.concatenate([jnp.cos(x), jnp.sin(x)], axis=-1)       # (B, 320)
    wt = jnp.concatenate([params["wt_cos"], params["wt_sin"]], axis=0)
    h = theta @ params["w1"] + t_emb @ wt + params["b1"]
    h = h * jax.nn.sigmoid(h)
    return h @ params["w2"] + params["b2"]


def init_params(key, D, H):
    k1, k2, k3, k4 = jax.random.split(key, 4)
    return {
        "w1": jax.random.normal(k1, (D, H), jnp.float32) * 0.02,
        "wt_cos": jax.random.normal(k2, (TIME_DIM, H), jnp.float32) * 0.02,
        "wt_sin": jax.random.normal(k3, (TIME_DIM, H), jnp.float32) * 0.02,
        "b1": jnp.zeros((1, H), jnp.float32),
        "w2": jax.random.normal(k4, (H, D), jnp.float32) * 0.02,
        "b2": jnp.zeros((1, D), jnp.float32),
    }


if __name__ == "__main__":
    key = jax.random.PRNGKey(0)
    k_theta, k_t, k_params = jax.random.split(key, 3)

    # (B, D, H, force_d_tiling): exercises the collapsed path, batch padding /
    # multi-batch-tile path, D-padding path, and the D-tiled fallback kernel.
    cases = [(2, 256, 128, False),
             (20, 256, 128, False),
             (20, 200, 128, False),
             (20, 256, 128, True)]

    for idx, (B, D, H, force_tile) in enumerate(cases):
        params = init_params(jax.random.fold_in(k_params, idx), D, H)
        theta = jax.random.normal(jax.random.fold_in(k_theta, idx), (B, D), jnp.float32)
        t = jax.random.uniform(jax.random.fold_in(k_t, idx), (B,), jnp.float32)

        out = jax.block_until_ready(
            bfn_forward(theta, t, params, force_d_tiling=force_tile))
        ref = ref_forward(theta, t, params)

        assert out.shape == (B, D)
        # bf16 MXU operands with f32 accumulation -> intentional bf16-level
        # precision loss vs. the f32 PyTorch module (tolerance reflects that).
        err = float(jnp.max(jnp.abs(out - ref)))
        assert jnp.allclose(out, ref, atol=5e-3, rtol=5e-2), (
            f"case {idx} (B={B}, D={D}, H={H}, tiled={force_tile}): "
            f"max abs diff {err}")

    # TODO(synk): cts_output_prediction / process_infinity / process_discrete /
    # sample wrap an external EMA helper and host-side RNG training/sampling
    # loops; only the forward hot path (time embedding + unet stand-in MLP) is
    # kernelized here.
    print("KERNEL_OK")
</pallas_src>

<mosaic_0001>
module attributes {stable_mosaic.version = 11 : i64} {
  func.func @bfn_kernel_fused(%arg0: i32, %arg1: memref<16x1xf32, #tpu.memory_space<vmem>>, %arg2: memref<16x256xbf16, #tpu.memory_space<vmem>>, %arg3: memref<1x320xf32, #tpu.memory_space<vmem>>, %arg4: memref<1x320xf32, #tpu.memory_space<vmem>>, %arg5: memref<256x128xbf16, #tpu.memory_space<vmem>>, %arg6: memref<320x128xbf16, #tpu.memory_space<vmem>>, %arg7: memref<1x128xf32, #tpu.memory_space<vmem>>, %arg8: memref<128x256xbf16, #tpu.memory_space<vmem>>, %arg9: memref<1x256xf32, #tpu.memory_space<vmem>>, %arg10: memref<16x256xf32, #tpu.memory_space<vmem>>) attributes {dimension_semantics = [#tpu.dimension_semantics<parallel>], iteration_bounds = array<i64: 1>, scalar_prefetch = 0 : i64, scratch_operands = 0 : i64, tpu.core_type = #tpu.core_type<tc>, window_params = [{transform_indices = @transform_0, window_bounds = array<i64: 16, 1>}, {transform_indices = @transform_1, window_bounds = array<i64: 16, 256>}, {pipeline_mode = #tpu.pipeline_mode<synchronous>, transform_indices = @transform_2, window_bounds = array<i64: 1, 320>}, {pipeline_mode = #tpu.pipeline_mode<synchronous>, transform_indices = @transform_3, window_bounds = array<i64: 1, 320>}, {pipeline_mode = #tpu.pipeline_mode<synchronous>, transform_indices = @transform_4, window_bounds = array<i64: 256, 128>}, {pipeline_mode = #tpu.pipeline_mode<synchronous>, transform_indices = @transform_5, window_bounds = array<i64: 320, 128>}, {pipeline_mode = #tpu.pipeline_mode<synchronous>, transform_indices = @transform_6, window_bounds = array<i64: 1, 128>}, {pipeline_mode = #tpu.pipeline_mode<synchronous>, transform_indices = @transform_7, window_bounds = array<i64: 128, 256>}, {pipeline_mode = #tpu.pipeline_mode<synchronous>, transform_indices = @transform_8, window_bounds = array<i64: 1, 256>}, {transform_indices = @transform_9, window_bounds = array<i64: 16, 256>}]} {
    %c0 = arith.constant 0 : index
    %c0_0 = arith.constant 0 : index
    %0 = vector.load %arg1[%c0, %c0_0] : memref<16x1xf32, #tpu.memory_space<vmem>>, vector<16x1xf32>
    %c0_1 = arith.constant 0 : index
    %c0_2 = arith.constant 0 : index
    %1 = vector.load %arg3[%c0_1, %c0_2] : memref<1x320xf32, #tpu.memory_space<vmem>>, vector<1x320xf32>
    %2 = vector.broadcast %0 : vector<16x1xf32> to vector<16x320xf32>
    %3 = vector.broadcast %1 : vector<1x320xf32> to vector<16x320xf32>
    %4 = arith.mulf %2, %3 : vector<16x320xf32>
    %c0_3 = arith.constant 0 : index
    %c0_4 = arith.constant 0 : index
    %5 = vector.load %arg4[%c0_3, %c0_4] : memref<1x320xf32, #tpu.memory_space<vmem>>, vector<1x320xf32>
    %6 = vector.broadcast %5 : vector<1x320xf32> to vector<16x320xf32>
    %7 = arith.addf %4, %6 : vector<16x320xf32>
    %8 = math.cos %7 : vector<16x320xf32>
    %9 = arith.truncf %8 : vector<16x320xf32> to vector<16x320xbf16>
    %c0_5 = arith.constant 0 : index
    %c0_6 = arith.constant 0 : index
    %10 = vector.load %arg2[%c0_5, %c0_6] : memref<16x256xbf16, #tpu.memory_space<vmem>>, vector<16x256xbf16>
    %c0_7 = arith.constant 0 : index
    %c0_8 = arith.constant 0 : index
    %11 = vector.load %arg5[%c0_7, %c0_8] : memref<256x128xbf16, #tpu.memory_space<vmem>>, vector<256x128xbf16>
    %cst = arith.constant dense<0.000000e+00> : vector<16x128xf32>
    %12 = tpu.matmul %10, %11, %cst {dimension_numbers = #tpu.dot_dimension_numbers<[1], [0], [0], [1], [0, 0, 1, 1], [], []>} : vector<16x256xbf16>, vector<256x128xbf16>, vector<16x128xf32> -> vector<16x128xf32>
    %c0_9 = arith.constant 0 : index
    %c0_10 = arith.constant 0 : index
    %13 = vector.load %arg6[%c0_9, %c0_10] : memref<320x128xbf16, #tpu.memory_space<vmem>>, vector<320x128xbf16>
    %cst_11 = arith.constant dense<0.000000e+00> : vector<16x128xf32>
    %14 = tpu.matmul %9, %13, %cst_11 {dimension_numbers = #tpu.dot_dimension_numbers<[1], [0], [0], [1], [0, 0, 1, 1], [], []>} : vector<16x320xbf16>, vector<320x128xbf16>, vector<16x128xf32> -> vector<16x128xf32>
    %15 = arith.addf %12, %14 : vector<16x128xf32>
    %c0_12 = arith.constant 0 : index
    %c0_13 = arith.constant 0 : index
    %16 = vector.load %arg7[%c0_12, %c0_13] : memref<1x128xf32, #tpu.memory_space<vmem>>, vector<1x128xf32>
    %17 = vector.broadcast %16 : vector<1x128xf32> to vector<16x128xf32>
    %18 = arith.addf %15, %17 : vector<16x128xf32>
    %cst_14 = arith.constant 5.000000e-01 : f32
    %19 = vector.broadcast %cst_14 : f32 to vector<16x128xf32>
    %20 = arith.mulf %19, %18 : vector<16x128xf32>
    %21 = math.tanh %20 : vector<16x128xf32>
    %cst_15 = arith.constant 5.000000e-01 : f32
    %22 = vector.broadcast %cst_15 : f32 to vector<16x128xf32>
    %23 = arith.mulf %22, %21 : vector<16x128xf32>
    %cst_16 = arith.constant 5.000000e-01 : f32
    %24 = vector.broadcast %cst_16 : f32 to vector<16x128xf32>
    %25 = arith.addf %23, %24 : vector<16x128xf32>
    %26 = arith.mulf %18, %25 : vector<16x128xf32>
    %27 = arith.truncf %26 : vector<16x128xf32> to vector<16x128xbf16>
    %c0_17 = arith.constant 0 : index
    %c0_18 = arith.constant 0 : index
    %28 = vector.load %arg8[%c0_17, %c0_18] : memref<128x256xbf16, #tpu.memory_space<vmem>>, vector<128x256xbf16>
    %cst_19 = arith.constant dense<0.000000e+00> : vector<16x256xf32>
    %29 = tpu.matmul %27, %28, %cst_19 {dimension_numbers = #tpu.dot_dimension_numbers<[1], [0], [0], [1], [0, 0, 1, 1], [], []>} : vector<16x128xbf16>, vector<128x256xbf16>, vector<16x256xf32> -> vector<16x256xf32>
    %c0_20 = arith.constant 0 : index
    %c0_21 = arith.constant 0 : index
    %30 = vector.load %arg9[%c0_20, %c0_21] : memref<1x256xf32, #tpu.memory_space<vmem>>, vector<1x256xf32>
    %31 = vector.broadcast %30 : vector<1x256xf32> to vector<16x256xf32>
    %32 = arith.addf %29, %31 : vector<16x256xf32>
    %c0_22 = arith.constant 0 : index
    %c0_23 = arith.constant 0 : index
    %33 = vector.load %arg10[%c0_22, %c0_23] : memref<16x256xf32, #tpu.memory_space<vmem>>, vector<16x256xf32>
    tpu.vector_store %arg10[%c0_22, %c0_23], %32 {strides = array<i32>} : memref<16x256xf32, #tpu.memory_space<vmem>>, vector<16x256xf32>,
    return
  }
  func.func @transform_0(%arg0: i32) -> (i32, i32) {
    %c0_i32 = arith.constant 0 : i32
    %c0_i32_0 = arith.constant 0 : i32
    return %arg0, %c0_i32 : i32, i32
  }
  func.func @transform_1(%arg0: i32) -> (i32, i32) {
    %c0_i32 = arith.constant 0 : i32
    %c0_i32_0 = arith.constant 0 : i32
    return %arg0, %c0_i32 : i32, i32
  }
  func.func @transform_2(%arg0: i32) -> (i32, i32) {
    %c0_i32 = arith.constant 0 : i32
    %c0_i32_0 = arith.constant 0 : i32
    %c0_i32_1 = arith.constant 0 : i32
    return %c0_i32, %c0_i32_0 : i32, i32
  }
  func.func @transform_3(%arg0: i32) -> (i32, i32) {
    %c0_i32 = arith.constant 0 : i32
    %c0_i32_0 = arith.constant 0 : i32
    %c0_i32_1 = arith.constant 0 : i32
    return %c0_i32, %c0_i32_0 : i32, i32
  }
  func.func @transform_4(%arg0: i32) -> (i32, i32) {
    %c0_i32 = arith.constant 0 : i32
    %c0_i32_0 = arith.constant 0 : i32
    %c0_i32_1 = arith.constant 0 : i32
    return %c0_i32, %c0_i32_0 : i32, i32
  }
  func.func @transform_5(%arg0: i32) -> (i32, i32) {
    %c0_i32 = arith.constant 0 : i32
    %c0_i32_0 = arith.constant 0 : i32
    %c0_i32_1 = arith.constant 0 : i32
    return %c0_i32, %c0_i32_0 : i32, i32
  }
  func.func @transform_6(%arg0: i32) -> (i32, i32) {
    %c0_i32 = arith.constant 0 : i32
    %c0_i32_0 = arith.constant 0 : i32
    %c0_i32_1 = arith.constant 0 : i32
    return %c0_i32, %c0_i32_0 : i32, i32
  }
  func.func @transform_7(%arg0: i32) -> (i32, i32) {
    %c0_i32 = arith.constant 0 : i32
    %c0_i32_0 = arith.constant 0 : i32
    %c0_i32_1 = arith.constant 0 : i32
    return %c0_i32, %c0_i32_0 : i32, i32
  }
  func.func @transform_8(%arg0: i32) -> (i32, i32) {
    %c0_i32 = arith.constant 0 : i32
    %c0_i32_0 = arith.constant 0 : i32
    %c0_i32_1 = arith.constant 0 : i32
    return %c0_i32, %c0_i32_0 : i32, i32
  }
  func.func @transform_9(%arg0: i32) -> (i32, i32) {
    %c0_i32 = arith.constant 0 : i32
    %c0_i32_0 = arith.constant 0 : i32
    return %arg0, %c0_i32 : i32, i32
  }
}

module attributes {stable_mosaic.version = 11 : i64} {
  func.func @bfn_kernel_fused(%arg0: i32, %arg1: memref<16x1xf32, #tpu.memory_space<vmem>>, %arg2: memref<16x256xbf16, #tpu.memory_space<vmem>>, %arg3: memref<1x320xf32, #tpu.memory_space<vmem>>, %arg4: memref<1x320xf32, #tpu.memory_space<vmem>>, %arg5: memref<256x128xbf16, #tpu.memory_space<vmem>>, %arg6: memref<320x128xbf16, #tpu.memory_space<vmem>>, %arg7: memref<1x128xf32, #tpu.memory_space<vmem>>, %arg8: memref<128x256xbf16, #tpu.memory_space<vmem>>, %arg9: memref<1x256xf32, #tpu.memory_space<vmem>>, %arg10: memref<16x256xf32, #tpu.memory_space<vmem>>) attributes {dimension_semantics = [#tpu.dimension_semantics<parallel>], iteration_bounds = array<i64: 1>, scalar_prefetch = 0 : i64, scratch_operands = 0 : i64, tpu.core_type = #tpu.core_type<tc>, window_params = [{transform_indices = @transform_0, window_bounds = array<i64: 16, 1>}, {transform_indices = @transform_1, window_bounds = array<i64: 16, 256>}, {pipeline_mode = #tpu.pipeline_mode<synchronous>, transform_indices = @transform_2, window_bounds = array<i64: 1, 320>}, {pipeline_mode = #tpu.pipeline_mode<synchronous>, transform_indices = @transform_3, window_bounds = array<i64: 1, 320>}, {pipeline_mode = #tpu.pipeline_mode<synchronous>, transform_indices = @transform_4, window_bounds = array<i64: 256, 128>}, {pipeline_mode = #tpu.pipeline_mode<synchronous>, transform_indices = @transform_5, window_bounds = array<i64: 320, 128>}, {pipeline_mode = #tpu.pipeline_mode<synchronous>, transform_indices = @transform_6, window_bounds = array<i64: 1, 128>}, {pipeline_mode = #tpu.pipeline_mode<synchronous>, transform_indices = @transform_7, window_bounds = array<i64: 128, 256>}, {pipeline_mode = #tpu.pipeline_mode<synchronous>, transform_indices = @transform_8, window_bounds = array<i64: 1, 256>}, {transform_indices = @transform_9, window_bounds = array<i64: 16, 256>}]} {
    %c0 = arith.constant 0 : index
    %c0_0 = arith.constant 0 : index
    %0 = vector.load %arg1[%c0, %c0_0] : memref<16x1xf32, #tpu.memory_space<vmem>>, vector<16x1xf32>
    %c0_1 = arith.constant 0 : index
    %c0_2 = arith.constant 0 : index
    %1 = vector.load %arg3[%c0_1, %c0_2] : memref<1x320xf32, #tpu.memory_space<vmem>>, vector<1x320xf32>
    %2 = vector.broadcast %0 : vector<16x1xf32> to vector<16x320xf32>
    %3 = vector.broadcast %1 : vector<1x320xf32> to vector<16x320xf32>
    %4 = arith.mulf %2, %3 : vector<16x320xf32>
    %c0_3 = arith.constant 0 : index
    %c0_4 = arith.constant 0 : index
    %5 = vector.load %arg4[%c0_3, %c0_4] : memref<1x320xf32, #tpu.memory_space<vmem>>, vector<1x320xf32>
    %6 = vector.broadcast %5 : vector<1x320xf32> to vector<16x320xf32>
    %7 = arith.addf %4, %6 : vector<16x320xf32>
    %8 = math.cos %7 : vector<16x320xf32>
    %9 = arith.truncf %8 : vector<16x320xf32> to vector<16x320xbf16>
    %c0_5 = arith.constant 0 : index
    %c0_6 = arith.constant 0 : index
    %10 = vector.load %arg2[%c0_5, %c0_6] : memref<16x256xbf16, #tpu.memory_space<vmem>>, vector<16x256xbf16>
    %c0_7 = arith.constant 0 : index
    %c0_8 = arith.constant 0 : index
    %11 = vector.load %arg5[%c0_7, %c0_8] : memref<256x128xbf16, #tpu.memory_space<vmem>>, vector<256x128xbf16>
    %cst = arith.constant dense<0.000000e+00> : vector<16x128xf32>
    %12 = tpu.matmul %10, %11, %cst {dimension_numbers = #tpu.dot_dimension_numbers<[1], [0], [0], [1], [0, 0, 1, 1], [], []>} : vector<16x256xbf16>, vector<256x128xbf16>, vector<16x128xf32> -> vector<16x128xf32>
    %c0_9 = arith.constant 0 : index
    %c0_10 = arith.constant 0 : index
    %13 = vector.load %arg6[%c0_9, %c0_10] : memref<320x128xbf16, #tpu.memory_space<vmem>>, vector<320x128xbf16>
    %cst_11 = arith.constant dense<0.000000e+00> : vector<16x128xf32>
    %14 = tpu.matmul %9, %13, %cst_11 {dimension_numbers = #tpu.dot_dimension_numbers<[1], [0], [0], [1], [0, 0, 1, 1], [], []>} : vector<16x320xbf16>, vector<320x128xbf16>, vector<16x128xf32> -> vector<16x128xf32>
    %15 = arith.addf %12, %14 : vector<16x128xf32>
    %c0_12 = arith.constant 0 : index
    %c0_13 = arith.constant 0 : index
    %16 = vector.load %arg7[%c0_12, %c0_13] : memref<1x128xf32, #tpu.memory_space<vmem>>, vector<1x128xf32>
    %17 = vector.broadcast %16 : vector<1x128xf32> to vector<16x128xf32>
    %18 = arith.addf %15, %17 : vector<16x128xf32>
    %cst_14 = arith.constant 5.000000e-01 : f32
    %19 = vector.broadcast %cst_14 : f32 to vector<16x128xf32>
    %20 = arith.mulf %19, %18 : vector<16x128xf32>
    %21 = math.tanh %20 : vector<16x128xf32>
    %cst_15 = arith.constant 5.000000e-01 : f32
    %22 = vector.broadcast %cst_15 : f32 to vector<16x128xf32>
    %23 = arith.mulf %22, %21 : vector<16x128xf32>
    %cst_16 = arith.constant 5.000000e-01 : f32
    %24 = vector.broadcast %cst_16 : f32 to vector<16x128xf32>
    %25 = arith.addf %23, %24 : vector<16x128xf32>
    %26 = arith.mulf %18, %25 : vector<16x128xf32>
    %27 = arith.truncf %26 : vector<16x128xf32> to vector<16x128xbf16>
    %c0_17 = arith.constant 0 : index
    %c0_18 = arith.constant 0 : index
    %28 = vector.load %arg8[%c0_17, %c0_18] : memref<128x256xbf16, #tpu.memory_space<vmem>>, vector<128x256xbf16>
    %cst_19 = arith.constant dense<0.000000e+00> : vector<16x256xf32>
    %29 = tpu.matmul %27, %28, %cst_19 {dimension_numbers = #tpu.dot_dimension_numbers<[1], [0], [0], [1], [0, 0, 1, 1], [], []>} : vector<16x128xbf16>, vector<128x256xbf16>, vector<16x256xf32> -> vector<16x256xf32>
    %c0_20 = arith.constant 0 : index
    %c0_21 = arith.constant 0 : index
    %30 = vector.load %arg9[%c0_20, %c0_21] : memref<1x256xf32, #tpu.memory_space<vmem>>, vector<1x256xf32>
    %31 = vector.broadcast %30 : vector<1x256xf32> to vector<16x256xf32>
    %32 = arith.addf %29, %31 : vector<16x256xf32>
    %c0_22 = arith.constant 0 : index
    %c0_23 = arith.constant 0 : index
    %33 = vector.load %arg10[%c0_22, %c0_23] : memref<16x256xf32, #tpu.memory_space<vmem>>, vector<16x256xf32>
    tpu.vector_store %arg10[%c0_22, %c0_23], %32 {strides = array<i32>} : memref<16x256xf32, #tpu.memory_space<vmem>>, vector<16x256xf32>,
    return
  }
  func.func @transform_0(%arg0: i32) -> (i32, i32) {
    %c0_i32 = arith.constant 0 : i32
    %c0_i32_0 = arith.constant 0 : i32
    return %arg0, %c0_i32 : i32, i32
  }
  func.func @transform_1(%arg0: i32) -> (i32, i32) {
    %c0_i32 = arith.constant 0 : i32
    %c0_i32_0 = arith.constant 0 : i32
    return %arg0, %c0_i32 : i32, i32
  }
  func.func @transform_2(%arg0: i32) -> (i32, i32) {
    %c0_i32 = arith.constant 0 : i32
    %c0_i32_0 = arith.constant 0 : i32
    %c0_i32_1 = arith.constant 0 : i32
    return %c0_i32, %c0_i32_0 : i32, i32
  }
  func.func @transform_3(%arg0: i32) -> (i32, i32) {
    %c0_i32 = arith.constant 0 : i32
    %c0_i32_0 = arith.constant 0 : i32
    %c0_i32_1 = arith.constant 0 : i32
    return %c0_i32, %c0_i32_0 : i32, i32
  }
  func.func @transform_4(%arg0: i32) -> (i32, i32) {
    %c0_i32 = arith.constant 0 : i32
    %c0_i32_0 = arith.constant 0 : i32
    %c0_i32_1 = arith.constant 0 : i32
    return %c0_i32, %c0_i32_0 : i32, i32
  }
  func.func @transform_5(%arg0: i32) -> (i32, i32) {
    %c0_i32 = arith.constant 0 : i32
    %c0_i32_0 = arith.constant 0 : i32
    %c0_i32_1 = arith.constant 0 : i32
    return %c0_i32, %c0_i32_0 : i32, i32
  }
  func.func @transform_6(%arg0: i32) -> (i32, i32) {
    %c0_i32 = arith.constant 0 : i32
    %c0_i32_0 = arith.constant 0 : i32
    %c0_i32_1 = arith.constant 0 : i32
    return %c0_i32, %c0_i32_0 : i32, i32
  }
  func.func @transform_7(%arg0: i32) -> (i32, i32) {
    %c0_i32 = arith.constant 0 : i32
    %c0_i32_0 = arith.constant 0 : i32
    %c0_i32_1 = arith.constant 0 : i32
    return %c0_i32, %c0_i32_0 : i32, i32
  }
  func.func @transform_8(%arg0: i32) -> (i32, i32) {
    %c0_i32 = arith.constant 0 : i32
    %c0_i32_0 = arith.constant 0 : i32
    %c0_i32_1 = arith.constant 0 : i32
    return %c0_i32, %c0_i32_0 : i32, i32
  }
  func.func @transform_9(%arg0: i32) -> (i32, i32) {
    %c0_i32 = arith.constant 0 : i32
    %c0_i32_0 = arith.constant 0 : i32
    return %arg0, %c0_i32 : i32, i32
  }
}

</mosaic_0001>

<bundles_post_ra>
// kernel: tpu_custom_call.1
= control target key start
LH: loop header
LB: loop body
LE: loop exit
PB: predicated region body
PF: predicated region fallthrough
CT: control target
= control target key end

     0   :  { %14 = vsyncpa [#allocation3], 0  ;;  %s2487_s0 = inlined_call_operand.vmem [shape: f32[16,1], index: 0, kind: input, shape index: {}]   ;;  %s2488_s1 = inlined_call_operand.vmem [shape: bf16[16,256], index: 1, kind: input, shape index: {}]   ;;  %s2489_s2 = inlined_call_operand.vmem [shape: f32[1,320], index: 2, kind: input, shape index: {}]   ;;  %s2490_s3 = inlined_call_operand.vmem [shape: f32[1,320], index: 3, kind: input, shape index: {}]   ;;  %s2491_s4 = inlined_call_operand.hbm [shape: bf16[256,128], index: 4, kind: input, shape index: {}]   ;;  %s2492_s5 = inlined_call_operand.hbm [shape: bf16[320,128], index: 5, kind: input, shape index: {}]   ;;  %s2493_s6 = inlined_call_operand.vmem [shape: f32[1,128], index: 6, kind: input, shape index: {}]   ;;  %s2494_s7 = inlined_call_operand.hbm [shape: bf16[128,256], index: 7, kind: input, shape index: {}]   ;;  %s2495_s8 = inlined_call_operand.vmem [shape: f32[1,256], index: 8, kind: input, shape index: {}]   ;;  %s2496_s9 = inlined_call_operand.hbm [shape: f32[16,256], index: 9, kind: output, shape index: {}]  }
   0x1   :  { %15 = vsyncpa [#allocation6], 0 }
   0x2   :  { %16 = vsyncpa [#allocation4], 0  ;;  %s1744_s30 = smov [#allocation5]   ;;  %s1745_s11 = smov [#allocation2]  }
   0x3   :  { %s42_s10 = sshll.u32 %s1744_s30, 4  ;;  %s30_s12 = sshll.u32 %s1745_s11, 4  ;;  %s43_s10 = int_to_ptr.vmem [resolvable:$true] %s42_s10  ;;  %s1813_s12 = int_to_ptr.vmem [resolvable:$true] %s30_s12 }
   0x4   :  { %s1650_s15 = scalar_lea.hbm %s2492_s5, 2560 }
   0x5   :  { %p1651_p0 = scmp.ne.s32.totalorder %s2492_s5, %s1650_s15  ;;  %p1654_p1 = scmp.lt.u32.totalorder %s1650_s15, %s2492_s5 }
   0x7   :  { %p1656_p2 = pnand %p1654_p1, %p1651_p0 }
   0x9   :  { %1659 = shalt.err (!%p1656_p2)
}
   0xa   :  { %s1660_s20 = scalar_lea.vmem %s43_s10, 2560  ;;  %p1665_p4 = scmp.lt.s32.totalorder %s43_s10, %s43_s10 }
   0xb   :  { %p1661_p3 = scmp.ne.s32.totalorder %s43_s10, %s1660_s20  ;;  %p1666_p5 = scmp.lt.s32.totalorder %s1660_s20, %s1660_s20 }
   0xd   :  { %p1667_p6 = por %p1666_p5, %p1665_p4 }
   0xf   :  { %p1668_p7 = pnand %p1667_p6, %p1661_p3 }
  0x11   :  { %1671 = shalt.err (!%p1668_p7)
}
  0x12   :  { %s1746_s21 = smov 64   ;;  %s1747_s22 = smov 4  }
  0x13   :  { %48 = dma.hbm_to_vmem [thread:$0]  %s2492_s5, 2560, %s43_s10, [#allocation6], %s1746_s21, %s1746_s21, %s1747_s22  }
  0x14   :  { %s1672_s27 = scalar_lea.hbm %s2491_s4, 2048 }
  0x15   :  { %p1673_p8 = scmp.ne.s32.totalorder %s2491_s4, %s1672_s27  ;;  %p1676_p9 = scmp.lt.u32.totalorder %s1672_s27, %s2491_s4 }
  0x17   :  { %p1678_p10 = pnand %p1676_p9, %p1673_p8 }
  0x19   :  { %1681 = shalt.err (!%p1678_p10)
}
  0x1a   :  { %s1682_s13 = scalar_lea.vmem %s1813_s12, 2048  ;;  %p1687_p12 = scmp.lt.s32.totalorder %s1813_s12, %s1813_s12 }
  0x1b   :  { %p1683_p11 = scmp.ne.s32.totalorder %s1813_s12, %s1682_s13  ;;  %p1688_p13 = scmp.lt.s32.totalorder %s1682_s13, %s1682_s13 }
  0x1d   :  { %p1689_p0 = por %p1688_p13, %p1687_p12 }
  0x1f   :  { %p1690_p1 = pnand %p1689_p0, %p1683_p11 }
  0x21   :  { %1693 = shalt.err (!%p1690_p1)
}
  0x22   :  { %36 = dma.hbm_to_vmem [thread:$0]  %s2491_s4, 2048, %s1813_s12, [#allocation3], %s1746_s21, %s1746_s21, %s1747_s22  }
  0x23   :  { %s1748_s14 = smov [#allocation7]   ;;  %s1694_s18 = scalar_lea.hbm %s2494_s7, 2048 }
  0x24   :  { %s56_s15 = sshll.u32 %s1748_s14, 4  ;;  %p1695_p2 = scmp.ne.s32.totalorder %s2494_s7, %s1694_s18  ;;  %s57_s15 = int_to_ptr.vmem [resolvable:$true] %s56_s15 }
  0x25   :  { %p1698_p3 = scmp.lt.u32.totalorder %s1694_s18, %s2494_s7 }
  0x27   :  { %p1700_p4 = pnand %p1698_p3, %p1695_p2 }
  0x29   :  { %1703 = shalt.err (!%p1700_p4)
}
  0x2a   :  { %s1704_s25 = scalar_lea.vmem %s57_s15, 2048  ;;  %p1709_p6 = scmp.lt.s32.totalorder %s57_s15, %s57_s15 }
  0x2b   :  { %p1705_p5 = scmp.ne.s32.totalorder %s57_s15, %s1704_s25  ;;  %p1710_p7 = scmp.lt.s32.totalorder %s1704_s25, %s1704_s25 }
  0x2d   :  { %p1711_p8 = por %p1710_p7, %p1709_p6 }
  0x2f   :  { %p1712_p9 = pnand %p1711_p8, %p1705_p5 }
  0x31   :  { %1715 = shalt.err (!%p1712_p9)
}
  0x32   :  { %s1749_s4 = smov 128   ;;  %s1750_s12 = smov 8  }
  0x33   :  { %62 = dma.hbm_to_vmem [thread:$0]  %s2494_s7, 2048, %s57_s15, [#allocation6], %s1749_s4, %s1749_s4, %s1750_s12  }
  0x34   :  { %1738 = dma.done.wait [#allocation3], 2048  }
  0x35   :  { %1739 = vsyncadd [#allocation3], 4294965248 }
  0x36   :  { %1740 = dma.done.wait [#allocation6], 4608  }
  0x37   :  { %1741 = vsyncadd [#allocation6], 4294962688  ;;  %v2497_v0 = vmov 0   ;;  %v75_v1 = vld [vmem:[%s2487_s0] sm:$0xff]  ;;  %v76_v2 = vld [vmem:[%s2487_s0 + $0x8] sm:$0xff]  ;;  %v1752_v12 = vmov 0.0   ;;  %v89_v25 = vlaneseq }
  0x38   :  { %1558 = vset.pattern.permute.xlu0 %v2497_v0  ;;  %v1559_v3 = vld [vmem:[#allocation5 + $0x40] sm:$0xff]   ;;  %v1561_v5 = vld [vmem:[#allocation5 + $0x48] sm:$0xff]   ;;  %v1563_v7 = vld [vmem:[#allocation5 + $0x50] sm:$0xff]   ;;  %1503 = vmatprep.subr.bf16.mxu1 %v1752_v12  ;;  %vm1753_vm0 = vmmov 0   ;;  %s1760_s15 = smov [#allocation8]  }
  0x39   :  { %80 = vperm.xlu0 %1558, %v75_v1   ;;  %v1560_v4 = vld [vmem:[#allocation5] sm:$0xff]   ;;  %1454 = vmatprep.subr.bf16.mxu0 %v1559_v3  ;;  %v1562_v6 = vld [vmem:[#allocation5 + $0x8] sm:$0xff]   ;;  %v1564_v8 = vld [vmem:[#allocation5 + $0x10] sm:$0xff]   ;;  %v90_v26 = vshrl.u32 %v89_v25, 7  ;;  %s1361_s16 = sshll.u32 %s1760_s15, 4  ;;  %s1362_s16 = int_to_ptr.vmem [resolvable:$true] %s1361_s16 }
  0x3a   :  { %1455 = vmatpush3.bf16.msra.mxu0 %v1560_v4  ;;  %v1565_v9 = vld [vmem:[#allocation5 + $0x58] sm:$0xff]   ;;  %v1567_v11 = vld [vmem:[#allocation5 + $0x80] sm:$0xff]   ;;  %1511 = vmatprep.mubr.msk.bf16.mxu1 %vm1753_vm0, %v1752_v12  ;;  %v1570_v14 = vld [vmem:[#allocation5 + $0x88] sm:$0xff]   ;;  %p1721_p11 = scmp.lt.s32.totalorder %s1362_s16, %s1362_s16 }
  0x3b   :  { %1456 = vmatprep.subr.bf16.mxu0 %v1561_v5  ;;  %v1566_v10 = vld [vmem:[#allocation5 + $0x18] sm:$0xff]   ;;  %v1568_v13 = vld [vmem:[#allocation5 + $0x60] sm:$0xff]   ;;  %1504 = vmatpush3.bf16.msra.mxu1 %v1567_v11  ;;  %v1571_v16 = vld [vmem:[#allocation5 + $0x68] sm:$0xff]   ;;  %v1863_v27 = vsub.s32 0, %v90_v26  ;;  %v1865_v28 = vsub.s32 1, %v90_v26  ;;  %v99_v29 = vsub.s32 2, %v90_v26 }
  0x3c   :  { %v1569_v15 = vld [vmem:[#allocation5 + $0x20] sm:$0xff]   ;;  %1505 = vmatprep.subr.bf16.mxu1 %v1752_v12  ;;  %v1573_v17 = vld [vmem:[#allocation5 + $0x90] sm:$0xff]   ;;  %v1572_v18 = vld [vmem:[#allocation5 + $0x28] sm:$0xff]  }
  0x3d   :  { %85 = vperm.xlu0 %1558, %v76_v2   ;;  %v1574_v19 = vld [vmem:[#allocation5 + $0x70] sm:$0xff]   ;;  %v1576_v20 = vld [vmem:[#allocation5 + $0x98] sm:$0xff]   ;;  %v1579_v22 = vld [vmem:[#allocation2 + $0x40] sm:$0xff]  }
  0x3e   :  { %1457 = vmatpush3.bf16.msra.mxu0 %v1562_v6  ;;  %v1575_v21 = vld [vmem:[#allocation5 + $0x30] sm:$0xff]   ;;  %v1577_v23 = vld [vmem:[#allocation5 + $0x78] sm:$0xff]   ;;  %v77_v30 = vld [vmem:[%s2489_s2] sm:$0x7] }
  0x3f   :  { %1458 = vmatprep.subr.bf16.mxu0 %v1563_v7  ;;  %1506 = vmatpush3.bf16.msra.mxu1 %v1570_v14  ;;  %v1578_v24 = vld [vmem:[#allocation5 + $0x38] sm:$0xff]   ;;  %v110_v31 = vld [vmem:[%s2490_s3] sm:$0x7]  ;;  %v92_v32 = vrot.slane %v77_v30, %v1863_v27  ;;  %v96_v33 = vrot.slane %v77_v30, %v1865_v28  ;;  %v100_v34 = vrot.slane %v77_v30, %v99_v29 }
  0x40   :  { %1507 = vmatprep.subr.bf16.mxu1 %v1752_v12  ;;  %v115_v35 = vrot.slane %v110_v31, %v1863_v27  ;;  %v119_v36 = vrot.slane %v110_v31, %v1865_v28  ;;  %v123_v37 = vrot.slane %v110_v31, %v99_v29 }
  0x42   :  { %1459 = vmatpush3.bf16.msra.mxu0 %v1564_v8 }
  0x43   :  { %1460 = vmatprep.subr.bf16.mxu0 %v1565_v9  ;;  %1508 = vmatpush3.bf16.msra.mxu1 %v1573_v17 }
  0x44   :  { %1509 = vmatprep.subr.bf16.mxu1 %v1752_v12 }
  0x46   :  { %1461 = vmatpush3.bf16.msra.mxu0 %v1566_v10 }
  0x47   :  { %1462 = vmatprep.subr.bf16.mxu0 %v1568_v13  ;;  %1510 = vmatpush3.bf16.msra.mxu1 %v1576_v20 }
  0x48   :  { %1481 = vmatprep.subr.bf16.mxu1 %v1579_v22 }
  0x4a   :  { %1463 = vmatpush3.bf16.msra.mxu0 %v1569_v15 }
  0x4b   :  { %1464 = vmatprep.subr.bf16.mxu0 %v1571_v16 }
  0x4e   :  { %1465 = vmatpush3.bf16.msra.mxu0 %v1572_v18 }
  0x4f   :  { %1466 = vmatprep.subr.bf16.mxu0 %v1574_v19  ;;  %v1754_v19 = vmov 920167782  }
  0x52   :  { %1467 = vmatpush3.bf16.msra.mxu0 %v1575_v21  ;;  %v1755_v21 = vmov 1326507024  }
  0x53   :  { %1468 = vmatprep.subr.bf16.mxu0 %v1577_v23 }
  0x56   :  { %1469 = vmatpush3.bf16.msra.mxu0 %v1578_v24 }
  0xb8   :  { %v81_v38 = vpop.permute.xlu0 %80 }
  0xb9   :  { %v104_v39 = vmul.f32 %v92_v32, %v81_v38  ;;  %v105_v40 = vmul.f32 %v96_v33, %v81_v38  ;;  %v106_v41 = vmul.f32 %v100_v34, %v81_v38  ;;  %v2503_v38 = vmov 2131351028  }
  0xbb   :  { %v1877_v42 = vadd.f32 %v115_v35, %v104_v39  ;;  %v1879_v43 = vadd.f32 %v119_v36, %v105_v40  ;;  %v1881_v44 = vadd.f32 %v123_v37, %v106_v41  ;;  %v2501_v41 = vmov 2102212464  }
  0xbc   :  { %v86_v45 = vpop.permute.xlu0 %85 }
  0xbd   :  { %v136_v46 = vand.u32 2139095040, %v1877_v42  ;;  %v239_v47 = vand.u32 2139095040, %v1879_v43  ;;  %v2499_v48 = vand.u32 2147483647, %v1881_v44  ;;  %v342_v49 = vand.u32 2139095040, %v1881_v44 }
  0xbe   :  { %v107_v50 = vmul.f32 %v92_v32, %v86_v45  ;;  %v108_v51 = vmul.f32 %v96_v33, %v86_v45  ;;  %v109_v54 = vmul.f32 %v100_v34, %v86_v45  ;;  %v2507_v32 = vmov 683565275  }
  0xbf   :  { %v137_v52 = vshrl.u32 %v136_v46, 23  ;;  %v240_v53 = vshrl.u32 %v239_v47, 23  ;;  %v343_v55 = vshrl.u32 %v342_v49, 23  ;;  %v346_v61 = vand.u32 8388607, %v2499_v48 }
  0xc0   :  { %v1887_v56 = vadd.f32 %v115_v35, %v107_v50  ;;  %v1889_v57 = vadd.f32 %v119_v36, %v108_v51  ;;  %v1894_v2 = vadd.f32 %v123_v37, %v109_v54  ;;  %v2505_v34 = vmov 2475754826  }
  0xc1   :  { %v1374_v58 = vadd.s32 4294967169, %v137_v52  ;;  %v1378_v59 = vadd.s32 4294967169, %v240_v53  ;;  %v1382_v60 = vadd.s32 4294967169, %v343_v55  ;;  %v347_v7 = vor.u32 8388608, %v346_v61 }
  0xc2   :  { %v445_v62 = vand.u32 2139095040, %v1887_v56  ;;  %v548_v3 = vand.u32 2139095040, %v1889_v57  ;;  %v2500_v11 = vand.u32 2147483647, %v1894_v2  ;;  %v651_v15 = vand.u32 2139095040, %v1894_v2 }
  0xc3   :  { %v143_v63 = vadd.s32 1, %v1374_v58  ;;  %v246_v1 = vadd.s32 1, %v1378_v59  ;;  %v349_v4 = vadd.s32 1, %v1382_v60  ;;  %v1909_v18 = vshll.u32 %v347_v7, 8 }
  0xc4   :  { %v446_v5 = vshrl.u32 %v445_v62, 23  ;;  %v549_v10 = vshrl.u32 %v548_v3, 23  ;;  %v1924_v24 = vand.u32 8388607, %v2500_v11  ;;  %v652_v30 = vshrl.u32 %v651_v15, 23 }
  0xc5   :  { %vm144_vm1 = vcmp.gt.s32.totalorder %v143_v63, 0  ;;  %vm247_vm2 = vcmp.gt.s32.totalorder %v246_v1, 0  ;;  %vm350_vm3 = vcmp.gt.s32.totalorder %v349_v4, 0 }
  0xc6   :  { %v1897_v6 = vsel %vm144_vm1, %v143_v63, 0  ;;  %v1386_v8 = vadd.s32 4294967169, %v446_v5  ;;  %v1903_v12 = vsel %vm247_vm2, %v246_v1, 0  ;;  %v351_v13 = vsel %vm350_vm3, %v349_v4, 0 }
  0xc7   :  { %v1900_v9 = vand.u32 31, %v1897_v6  ;;  %v353_v17 = vand.u32 31, %v351_v13  ;;  %v1920_v23 = vand.u32 31, %v1903_v12  ;;  %v352_v25 = vshrl.u32 %v351_v13, 5 }
  0xc8   :  { %v452_v14 = vadd.s32 1, %v1386_v8  ;;  %v1390_v29 = vadd.s32 4294967169, %v549_v10 }
  0xc9   :  { %v1907_v16 = vsub.s32 32, %v1900_v9  ;;  %v1913_v20 = vshll.u32 %v1754_v19, %v1900_v9  ;;  %v354_v26 = vsub.s32 32, %v353_v17  ;;  %v356_v33 = vshll.u32 %v2507_v32, %v353_v17 }
  0xca   :  { %vm453_vm4 = vcmp.gt.s32.totalorder %v452_v14, 0  ;;  %v359_v35 = vshll.u32 %v2505_v34, %v353_v17  ;;  %v362_v40 = vshll.u32 %v2503_v38, %v353_v17  ;;  %v365_v46 = vshll.u32 %v2501_v41, %v353_v17 }
  0xcb   :  { %v1917_v22 = vshrl.u32 %v1755_v21, %v1907_v16  ;;  %v1931_v36 = vsel %vm453_vm4, %v452_v14, 0  ;;  %v357_v37 = vshrl.u32 %v2505_v34, %v354_v26  ;;  %v360_v39 = vshrl.u32 %v2503_v38, %v354_v26 }
  0xcc   :  { %v363_v45 = vshrl.u32 %v2501_v41, %v354_v26  ;;  %v366_v47 = vshrl.u32 %v1754_v19, %v354_v26  ;;  %v368_v49 = vshll.u32 %v1754_v19, %v353_v17  ;;  %v369_v50 = vshrl.u32 %v1755_v21, %v354_v26 }
  0xcd   :  { %v358_v51 = vor.u32 %v357_v37, %v356_v33  ;;  %v361_v52 = vor.u32 %v360_v39, %v359_v35  ;;  %v555_v54 = vadd.s32 1, %v1390_v29  ;;  %v355_v55 = vshrl.u32 %v2507_v32, %v354_v26 }
  0xce   :  { %v364_v53 = vor.u32 %v363_v45, %v362_v40  ;;  %v367_v58 = vor.u32 %v366_v47, %v365_v46  ;;  %v370_v59 = vor.u32 %v369_v50, %v368_v49  ;;  %vm371_vm5 = vcmp.lt.s32.totalorder %v352_v25, 1 }
  0xcf   :  { %vm373_vm6 = vcmp.lt.s32.totalorder %v352_v25, 3  ;;  %vm374_vm7 = vcmp.lt.s32.totalorder %v352_v25, 4  ;;  %v379_v60 = vsel %vm371_vm5, %v358_v51, %v361_v52  ;;  %vm372_vm8 = vcmp.lt.s32.totalorder %v352_v25, 2 }
  0xd0   :  { %v383_v61 = vsel %vm371_vm5, %v361_v52, %v364_v53  ;;  %v376_v62 = vsel %vm374_vm7, %v364_v53, 2102212464  ;;  %v380_v63 = vsel %vm374_vm7, %v367_v58, 920167782  ;;  %v384_v1 = vsel %vm374_vm7, %v370_v59, 1326507024 }
  0xd1   :  { %v375_v3 = vsel %vm371_vm5, %v355_v55, %v358_v51  ;;  %v381_v4 = vsel %vm373_vm6, %v364_v53, %v380_v63  ;;  %v385_v5 = vsel %vm373_vm6, %v367_v58, %v384_v1  ;;  %v377_v7 = vsel %vm373_vm6, %v361_v52, %v376_v62 }
  0xd2   :  { %v382_v8 = vsel %vm372_vm8, %v379_v60, %v381_v4  ;;  %v386_v10 = vsel %vm372_vm8, %v383_v61, %v385_v5  ;;  %v1943_v13 = vand.u32 31, %v1931_v36  ;;  %v378_v25 = vsel %vm372_vm8, %v375_v3, %v377_v7 }
  0xd3   :  { %v1946_v14 = vmul.u32.u64.low %v1909_v18, %v386_v10  ;;  %v1947_v15 = vmul.u32.u64.high %v1909_v18, %v386_v10, %v1946_v14  ;;  %v1950_v17 = vmul.u32.u64.low %v1909_v18, %v382_v8  ;;  %v1951_v26 = vmul.u32.u64.high %v1909_v18, %v382_v8, %v1950_v17 }
  0xd4   :  { %v1954_v29 = vsub.s32 32, %v1943_v13  ;;  %vm556_vm9 = vcmp.gt.s32.totalorder %v555_v54, 0  ;;  %v1394_v33 = vadd.s32 4294967169, %v652_v30  ;;  %v2498_v35 = vand.u32 2147483647, %v1879_v43 }
  0xd5   :  { %v1958_v37 = vsub.s32 32, %v1920_v23  ;;  %v1962_v39 = vshll.u32 %v1754_v19, %v1943_v13  ;;  %vm396_vm10 = vc.u32 %v1947_v15, %v1950_v17  ;;  %v397_v45 = vadd.s32 1, %v1951_v26 }
  0xd6   :  { %v1966_v40 = vshrl.u32 %v1755_v21, %v1954_v29  ;;  %v656_v46 = vor.u32 8388608, %v1924_v24  ;;  %v394_v30 = vmul.u32 %v1909_v18, %v378_v25  ;;  %v1974_v49 = vsel %vm556_vm9, %v555_v54, 0 }
  0xd7   :  { %v658_v50 = vadd.s32 1, %v1394_v33  ;;  %v398_v51 = vsel %vm396_vm10, %v397_v45, %v1951_v26  ;;  %v1979_v52 = vand.u32 8388607, %v2498_v35  ;;  %v1982_v53 = vshrl.u32 %v1903_v12, 5 }
  0xd8   :  { %v399_v55 = vadd.s32 %v398_v51, %v394_v30  ;;  %v1986_v24 = vshrl.u32 %v2507_v32, %v1958_v37  ;;  %v1989_v18 = vadd.s32 %v1950_v17, %v1947_v15  ;;  %v1992_v54 = vand.u32 31, %v1974_v49 }
  0xd9   :  { %vm659_vm11 = vcmp.gt.s32.totalorder %v658_v50, 0  ;;  %v1994_v58 = vshll.u32 %v656_v46, 8  ;;  %v244_v61 = vor.u32 8388608, %v1979_v52  ;;  %v253_v12 = vshll.u32 %v2507_v32, %v1920_v23 }
  0xda   :  { %v400_v59 = vadd.s32 536870912, %v399_v55  ;;  %v660_v60 = vsel %vm659_vm11, %v658_v50, 0  ;;  %v254_v1 = vshrl.u32 %v2505_v34, %v1958_v37  ;;  %v256_v3 = vshll.u32 %v2505_v34, %v1920_v23 }
  0xdb   :  { %v661_v62 = vshrl.u32 %v660_v60, 5  ;;  %v662_v63 = vand.u32 31, %v660_v60  ;;  %v257_v5 = vshrl.u32 %v2503_v38, %v1958_v37  ;;  %v259_v7 = vshll.u32 %v2503_v38, %v1920_v23 }
  0xdc   :  { %v2003_v4 = vshrl.u32 %v400_v59, 30  ;;  %v260_v8 = vshrl.u32 %v2501_v41, %v1958_v37  ;;  %v262_v17 = vshll.u32 %v2501_v41, %v1920_v23  ;;  %vm268_vm1 = vcmp.lt.s32.totalorder %v1982_v53, 1 }
  0xdd   :  { %v663_v10 = vsub.s32 32, %v662_v63  ;;  %v665_v14 = vshll.u32 %v2507_v32, %v662_v63  ;;  %v668_v15 = vshll.u32 %v2505_v34, %v662_v63  ;;  %v671_v25 = vshll.u32 %v2503_v38, %v662_v63 }
  0xde   :  { %v402_v26 = vshll.u32 %v2003_v4, 30  ;;  %v674_v33 = vshll.u32 %v2501_v41, %v662_v63  ;;  %v677_v45 = vshll.u32 %v1754_v19, %v662_v63  ;;  %vm680_vm12 = vcmp.lt.s32.totalorder %v661_v62, 1 }
  0xdf   :  { %v666_v46 = vshrl.u32 %v2505_v34, %v663_v10  ;;  %v669_v30 = vshrl.u32 %v2503_v38, %v663_v10  ;;  %v672_v50 = vshrl.u32 %v2501_v41, %v663_v10  ;;  %v664_v59 = vshrl.u32 %v2507_v32, %v663_v10 }
  0xe0   :  { %v2022_v51 = vsub.s32 %v399_v55, %v402_v26  ;;  %v675_v60 = vshrl.u32 %v1754_v19, %v663_v10  ;;  %v678_v0 = vshrl.u32 %v1755_v21, %v663_v10  ;;  %vm682_vm13 = vcmp.lt.s32.totalorder %v661_v62, 3 }
  0xe1   :  { %v667_v35 = vor.u32 %v666_v46, %v665_v14  ;;  %v670_v47 = vor.u32 %v669_v30, %v668_v15  ;;  %v673_v31 = vor.u32 %v672_v50, %v671_v25  ;;  %vm683_vm14 = vcmp.lt.s32.totalorder %v661_v62, 4 }
  0xe2   :  { %v405_v63 = vsub.s32 0, %v2022_v51  ;;  %v676_v48 = vor.u32 %v675_v60, %v674_v33  ;;  %v679_v11 = vor.u32 %v678_v0, %v677_v45  ;;  %vm681_vm15 = vcmp.lt.s32.totalorder %v661_v62, 2 }
  0xe3   :  { %v684_v41 = vsel %vm680_vm12, %v664_v59, %v667_v35  ;;  %v685_v38 = vsel %vm683_vm14, %v673_v31, 2102212464  ;;  %v688_v55 = vsel %vm680_vm12, %v667_v35, %v670_v47  ;;  %v692_v26 = vsel %vm680_vm12, %v670_v47, %v673_v31 }
  0xe4   :  { %v1383_v34 = vmin.u32 %v405_v63, %v2022_v51  ;;  %v686_v32 = vsel %vm682_vm13, %v670_v47, %v685_v38  ;;  %v689_v10 = vsel %vm683_vm14, %v676_v48, 920167782  ;;  %v693_v14 = vsel %vm683_vm14, %v679_v11, 1326507024 }
  0xe5   :  { %v690_v15 = vsel %vm682_vm13, %v673_v31, %v689_v10  ;;  %v694_v25 = vsel %vm682_vm13, %v676_v48, %v693_v14  ;;  %v263_v33 = vshrl.u32 %v1754_v19, %v1958_v37  ;;  %v687_v45 = vsel %vm681_vm15, %v684_v41, %v686_v32 }
  0xe6   :  { %v407_v0 = vclz %v1383_v34  ;;  %v691_v46 = vsel %vm681_vm15, %v688_v55, %v690_v15  ;;  %v695_v30 = vsel %vm681_vm15, %v692_v26, %v694_v25  ;;  %v255_v38 = vor.u32 %v254_v1, %v253_v12 }
  0xe7   :  { %v2035_v50 = vmul.u32.u64.low %v1994_v58, %v695_v30  ;;  %v2036_v35 = vmul.u32.u64.high %v1994_v58, %v695_v30, %v2035_v50  ;;  %v2039_v59 = vmul.u32.u64.low %v1994_v58, %v691_v46  ;;  %v2040_v60 = vmul.u32.u64.high %v1994_v58, %v691_v46, %v2039_v59 }
  0xe8   :  { %v1384_v11 = vadd.s32 4294967294, %v407_v0  ;;  %v258_v31 = vor.u32 %v257_v5, %v256_v3  ;;  %v266_v48 = vshrl.u32 %v1755_v21, %v1958_v37  ;;  %v703_v34 = vmul.u32 %v1994_v58, %v687_v45 }
  0xe9   :  { %v261_v32 = vor.u32 %v260_v8, %v259_v7  ;;  %v264_v41 = vor.u32 %v263_v33, %v262_v17  ;;  %v265_v47 = vshll.u32 %v1754_v19, %v1920_v23  ;;  %vm269_vm2 = vcmp.lt.s32.totalorder %v1982_v53, 2 }
  0xea   :  { %vm1385_vm0 = vcmp.lt.s32.totalorder %v1384_v11, 0  ;;  %vm270_vm3 = vcmp.lt.s32.totalorder %v1982_v53, 3  ;;  %vm705_vm4 = vc.u32 %v2036_v35, %v2039_v59  ;;  %v706_v37 = vadd.s32 1, %v2040_v60 }
  0xeb   :  { %v410_v62 = vsel %vm1385_vm0, 0, %v1384_v11  ;;  %v267_v12 = vor.u32 %v266_v48, %v265_v47  ;;  %vm271_vm5 = vcmp.lt.s32.totalorder %v1982_v53, 4  ;;  %v272_v23 = vsel %vm268_vm1, %v1986_v24, %v255_v38 }
  0xec   :  { %v411_v58 = vsub.s32 32, %v410_v62  ;;  %v415_v1 = vsub.s32 4294967266, %v410_v62  ;;  %v707_v3 = vsel %vm705_vm4, %v706_v37, %v2040_v60  ;;  %v273_v5 = vsel %vm271_vm5, %v261_v32, 2102212464 }
  0xed   :  { %v276_v7 = vsel %vm268_vm1, %v255_v38, %v258_v31  ;;  %v277_v8 = vsel %vm271_vm5, %v264_v41, 920167782  ;;  %v708_v55 = vadd.s32 %v707_v3, %v703_v34  ;;  %v280_v24 = vsel %vm268_vm1, %v258_v31, %v261_v32 }
  0xee   :  { %v413_v17 = vshrl.u32 %v1989_v18, %v411_v58  ;;  %v416_v63 = vadd.s32 127, %v415_v1  ;;  %v278_v26 = vsel %vm270_vm3, %v261_v32, %v277_v8  ;;  %v281_v14 = vsel %vm271_vm5, %v267_v12, 1326507024 }
  0xef   :  { %v279_v10 = vsel %vm269_vm2, %v276_v7, %v278_v26  ;;  %v284_v15 = vshll.u32 %v244_v61, 8  ;;  %v709_v33 = vadd.s32 536870912, %v708_v55  ;;  %v274_v18 = vsel %vm270_vm3, %v258_v31, %v273_v5 }
  0xf0   :  { %v417_v25 = vshll.u32 %v416_v63, 23  ;;  %v282_v0 = vsel %vm270_vm3, %v264_v41, %v281_v14  ;;  %v412_v45 = vshll.u32 %v2022_v51, %v410_v62  ;;  %v560_v52 = vsub.s32 32, %v1992_v54 }
  0xf1   :  { %v283_v46 = vsel %vm269_vm2, %v280_v24, %v282_v0  ;;  %v2077_v30 = vmul.u32.u64.low %v284_v15, %v279_v10  ;;  %v2078_v50 = vmul.u32.u64.high %v284_v15, %v279_v10, %v2077_v30  ;;  %v2082_v61 = vshrl.u32 %v709_v33, 30 }
  0xf2   :  { %v418_v60 = vor.u32 4788187, %v417_v25  ;;  %v414_v11 = vor.u32 %v413_v17, %v412_v45  ;;  %v275_v38 = vsel %vm269_vm2, %v272_v23, %v274_v18  ;;  %v545_v34 = vand.u32 2147483647, %v1889_v57 }
  0xf3   :  { %v2086_v31 = vmul.u32.u64.low %v284_v15, %v283_v46  ;;  %v2087_v48 = vmul.u32.u64.high %v284_v15, %v283_v46, %v2086_v31  ;;  %v711_v51 = vshll.u32 %v2082_v61, 30  ;;  %v294_v41 = vadd.s32 1, %v2078_v50 }
  0xf4   :  { %v419_v32 = vand.u32 2147483647, %v418_v60  ;;  %v2093_v47 = vshrl.u32 %v1897_v6, 5  ;;  %v2096_v62 = vshrl.u32 %v1974_v49, 5  ;;  %v291_v53 = vmul.u32 %v284_v15, %v275_v38 }
  0xf5   :  { %v2098_v37 = vsub.s32 %v708_v55, %v711_v51  ;;  %v421_v12 = vcvt.s32.f32 %v414_v11  ;;  %vm293_vm6 = vc.u32 %v2087_v48, %v2077_v30  ;;  %v2509_v58 = vmov 683565275  }
  0xf6   :  { %v562_v1 = vshll.u32 %v2509_v58, %v1992_v54  ;;  %v2510_v23 = vmov 2475754826   ;;  %v295_v6 = vsel %vm293_vm6, %v294_v41, %v2078_v50  ;;  %v552_v49 = vand.u32 8388607, %v545_v34 }
  0xf7   :  { %v563_v3 = vshrl.u32 %v2510_v23, %v560_v52  ;;  %v714_v5 = vsub.s32 0, %v2098_v37  ;;  %v2511_v7 = vmov 2131351028   ;;  %v422_v17 = vmul.f32 %v421_v12, %v419_v32 }
  0xf8   :  { %v566_v8 = vshrl.u32 %v2511_v7, %v560_v52  ;;  %v296_v63 = vadd.s32 %v295_v6, %v291_v53  ;;  %v565_v55 = vshll.u32 %v2510_v23, %v1992_v54  ;;  %v2512_v26 = vmov 2102212464  }
  0xf9   :  { %v569_v10 = vshrl.u32 %v2512_v26, %v560_v52  ;;  %v1395_v24 = vmin.u32 %v714_v5, %v2098_v37  ;;  %v568_v14 = vshll.u32 %v2511_v7, %v1992_v54  ;;  %v571_v15 = vshll.u32 %v2512_v26, %v1992_v54 }
  0xfa   :  { %v572_v25 = vshrl.u32 %v1754_v19, %v560_v52  ;;  %v297_v33 = vadd.s32 536870912, %v296_v63  ;;  %v564_v18 = vor.u32 %v563_v3, %v562_v1  ;;  %v574_v0 = vshll.u32 %v1754_v19, %v1992_v54 }
  0xfb   :  { %v575_v45 = vshrl.u32 %v1755_v21, %v560_v52  ;;  %vm341_vm7 = vcmp.lt.s32.totalorder %v1881_v44, 0  ;;  %v716_v46 = vclz %v1395_v24  ;;  %v567_v50 = vor.u32 %v566_v8, %v565_v55 }
  0xfc   :  { %v570_v60 = vor.u32 %v569_v10, %v568_v14  ;;  %v573_v11 = vor.u32 %v572_v25, %v571_v15  ;;  %v160_v38 = vshrl.u32 %v1754_v19, %v1907_v16  ;;  %v2125_v31 = vshrl.u32 %v297_v33, 30 }
  0xfd   :  { %v576_v51 = vor.u32 %v575_v45, %v574_v0  ;;  %vm580_vm8 = vcmp.lt.s32.totalorder %v2096_v62, 4  ;;  %v704_v32 = vadd.s32 %v2039_v59, %v2036_v35  ;;  %v1396_v54 = vadd.s32 4294967294, %v716_v46 }
  0xfe   :  { %v561_v21 = vshrl.u32 %v2509_v58, %v560_v52  ;;  %v586_v41 = vsel %vm580_vm8, %v573_v11, 920167782  ;;  %v299_v53 = vshll.u32 %v2125_v31, 30  ;;  %v553_v12 = vor.u32 8388608, %v552_v49 }
  0xff   :  { %vm577_vm9 = vcmp.lt.s32.totalorder %v2096_v62, 1  ;;  %vm579_vm10 = vcmp.lt.s32.totalorder %v2096_v62, 3  ;;  %v423_v1 = vxor.u32 2147483648, %v422_v17  ;;  %vm1397_vm11 = vcmp.lt.s32.totalorder %v1396_v54, 0 }
 0x100   :  { %v585_v3 = vsel %vm577_vm9, %v564_v18, %v567_v50  ;;  %v587_v35 = vsel %vm579_vm10, %v570_v60, %v586_v41  ;;  %v719_v59 = vsel %vm1397_vm11, 0, %v1396_v54  ;;  %v2140_v52 = vsub.s32 %v296_v63, %v299_v53 }
 0x101   :  { %v589_v5 = vsel %vm577_vm9, %v567_v50, %v570_v60  ;;  %v590_v6 = vsel %vm580_vm8, %v576_v51, 1326507024  ;;  %v720_v49 = vsub.s32 32, %v719_v59  ;;  %v724_v8 = vsub.s32 4294967266, %v719_v59 }
 0x102   :  { %vm578_vm12 = vcmp.lt.s32.totalorder %v2096_v62, 2  ;;  %v582_v55 = vsel %vm580_vm8, %v570_v60, 2102212464  ;;  %v721_v10 = vshll.u32 %v2098_v37, %v719_v59  ;;  %v302_v24 = vsub.s32 0, %v2140_v52 }
 0x103   :  { %v588_v63 = vsel %vm578_vm12, %v585_v3, %v587_v35  ;;  %v591_v14 = vsel %vm579_vm10, %v573_v11, %v590_v6  ;;  %v722_v15 = vshrl.u32 %v704_v32, %v720_v49  ;;  %v725_v25 = vadd.s32 127, %v724_v8 }
 0x104   :  { %v592_v33 = vsel %vm578_vm12, %v589_v5, %v591_v14  ;;  %v593_v0 = vshll.u32 %v553_v12, 8  ;;  %v424_v45 = vsel %vm341_vm7, %v423_v1, %v422_v17  ;;  %v1379_v46 = vmin.u32 %v302_v24, %v2140_v52 }
 0x105   :  { %v581_v37 = vsel %vm577_vm9, %v561_v21, %v564_v18  ;;  %v583_v60 = vsel %vm579_vm10, %v567_v50, %v582_v55  ;;  %v723_v51 = vor.u32 %v722_v15, %v721_v10  ;;  %v726_v54 = vshll.u32 %v725_v25, 23 }
 0x106   :  { %v2164_v11 = vmul.u32.u64.low %v593_v0, %v592_v33  ;;  %v2165_v32 = vmul.u32.u64.high %v593_v0, %v592_v33, %v2164_v11  ;;  %v159_v41 = vshll.u32 %v2512_v26, %v1900_v9  ;;  %vm650_vm13 = vcmp.lt.s32.totalorder %v1894_v2, 0 }
 0x107   :  { %v304_v53 = vclz %v1379_v46  ;;  %v2170_v17 = vmul.u32.u64.low %v593_v0, %v588_v63  ;;  %v2171_v12 = vmul.u32.u64.high %v593_v0, %v588_v63, %v2170_v17  ;;  %v2513_v18 = vand.u32 2147483647, %v1894_v2 }
 0x108   :  { %v727_v50 = vor.u32 4788187, %v726_v54  ;;  %v584_v1 = vsel %vm578_vm12, %v581_v37, %v583_v60  ;;  %v2516_v3 = vand.u32 2147483647, %v1881_v44  ;;  %v2188_v59 = vor.u32 %v160_v38, %v159_v41 }
 0x109   :  { %vm2176_vm14 = vcmp.le.f32.partialorder %v2513_v18, 0.7853982  ;;  %vm168_vm0 = vcmp.lt.s32.totalorder %v2093_v47, 4  ;;  %v469_v5 = vshrl.u32 %v1754_v19, %v1954_v29  ;;  %v1380_v6 = vadd.s32 4294967294, %v304_v53 }
 0x10a   :  { %vm2184_vm15 = vcmp.le.f32.partialorder %v2516_v3, 0.7853982  ;;  %v728_v62 = vand.u32 2147483647, %v727_v50  ;;  %v730_v8 = vcvt.s32.f32 %v723_v51  ;;  %vm602_vm1 = vc.u32 %v2165_v32, %v2170_v17 }
 0x10b   :  { %v427_v49 = vsel %vm2184_vm15, %v1881_v44, %v424_v45  ;;  %v425_v55 = vsub.s32 4, %v2003_v4  ;;  %vm1381_vm2 = vcmp.lt.s32.totalorder %v1380_v6, 0  ;;  %v600_v38 = vmul.u32 %v593_v0, %v584_v1 }
 0x10c   :  { %v603_v10 = vadd.s32 1, %v2171_v12  ;;  %1622 = vcosq.f32 %v427_v49  ;;  %v731_v24 = vmul.f32 %v730_v8, %v728_v62  ;;  %v307_v63 = vsel %vm1381_vm2, 0, %v1380_v6 }
 0x10d   :  { %1624 = vsinq.f32 %v427_v49  ;;  %v734_v19 = vsub.s32 4, %v2082_v61  ;;  %v292_v14 = vadd.s32 %v2077_v30, %v2087_v48  ;;  %v308_v15 = vsub.s32 32, %v307_v63 }
 0x10e   :  { %v312_v25 = vsub.s32 4294967266, %v307_v63  ;;  %v604_v33 = vsel %vm602_vm1, %v603_v10, %v2171_v12  ;;  %v468_v45 = vshll.u32 %v2512_v26, %v1943_v13  ;;  %v732_v46 = vxor.u32 2147483648, %v731_v24 }
 0x10f   :  { %v605_v0 = vadd.s32 %v604_v33, %v600_v38  ;;  %v426_v37 = vsel %vm341_vm7, %v425_v55, %v2003_v4  ;;  %v2210_v60 = vshrl.u32 %v1931_v36, 5  ;;  %v309_v51 = vshll.u32 %v2140_v52, %v307_v63 }
 0x110   :  { %v310_v54 = vshrl.u32 %v292_v14, %v308_v15  ;;  %v313_v30 = vadd.s32 127, %v312_v25  ;;  %v2213_v48 = vor.u32 %v469_v5, %v468_v45  ;;  %v733_v11 = vsel %vm650_vm13, %v732_v46, %v731_v24 }
 0x111   :  { %v606_v41 = vadd.s32 536870912, %v605_v0  ;;  %v735_v53 = vsel %vm650_vm13, %v734_v19, %v2082_v61  ;;  %v736_v4 = vsel %vm2176_vm14, %v1894_v2, %v733_v11  ;;  %v428_v52 = vsel %vm2184_vm15, 0, %v426_v37 }
 0x112   :  { %v311_v36 = vor.u32 %v310_v54, %v309_v51  ;;  %v314_v12 = vshll.u32 %v313_v30, 23  ;;  %v2228_v18 = vsel %vm168_vm0, %v2188_v59, 920167782  ;;  %1626 = vcosq.f32 %v736_v4 }
 0x113   :  { %v2230_v50 = vshrl.u32 %v606_v41, 30  ;;  %vm477_vm3 = vcmp.lt.s32.totalorder %v2210_v60, 4  ;;  %1628 = vsinq.f32 %v736_v4  ;;  %v737_v1 = vsel %vm2176_vm14, 0, %v735_v53 }
 0x114   :  { %v315_v61 = vor.u32 4788187, %v314_v12  ;;  %v2519_v3 = vor.u32 %v1917_v22, %v1913_v20  ;;  %v2245_v5 = vsel %vm477_vm3, %v2213_v48, 920167782  ;;  %v432_v49 = vand.u32 3, %v428_v52 }
 0x115   :  { %v608_v6 = vshll.u32 %v2230_v50, 30  ;;  %v2520_v21 = vor.u32 %v1966_v40, %v1962_v39  ;;  %v318_v22 = vcvt.s32.f32 %v311_v36  ;;  %v322_v55 = vsub.s32 4, %v2125_v31 }
 0x116   :  { %v2240_v35 = vsel %vm168_vm0, %v2519_v3, 1326507024  ;;  %v1623_v62 = vpop.eup %1622  ;;  %v316_v20 = vand.u32 2147483647, %v315_v61  ;;  %vm238_vm4 = vcmp.lt.s32.totalorder %v1879_v43, 0  ;;  %v741_v63 = vand.u32 3, %v737_v1 }
 0x117   :  { %v2253_v8 = vsel %vm477_vm3, %v2520_v21, 1326507024  ;;  %v1625_v38 = vpop.eup %1624  ;;  %v2257_v10 = vsub.s32 %v605_v0, %v608_v6  ;;  %v438_v24 = vxor.u32 2147483648, %v1623_v62  ;;  %v133_v19 = vand.u32 2147483647, %v1877_v42 }
 0x118   :  { %v319_v14 = vmul.f32 %v318_v22, %v316_v20  ;;  %v601_v39 = vadd.s32 %v2170_v17, %v2165_v32  ;;  %vm431_vm5 = vweird.f32 %v1881_v44  ;;  %v435_v40 = vxor.u32 2147483648, %v1625_v38 }
 0x119   :  { %v611_v15 = vsub.s32 0, %v2257_v10  ;;  %vm433_vm6 = vcmp.lt.s32.totalorder %v432_v49, 2  ;;  %vm434_vm7 = vcmp.eq.s32.totalorder %v432_v49, 0  ;;  %vm437_vm8 = vcmp.eq.s32.totalorder %v432_v49, 2 }
 0x11a   :  { %v436_v25 = vsel %vm434_vm7, %v1623_v62, %v435_v40  ;;  %v439_v33 = vsel %vm437_vm8, %v438_v24, %v1625_v38  ;;  %vm740_vm9 = vweird.f32 %v1894_v2  ;;  %v151_v45 = vshrl.u32 %v2510_v23, %v1907_v16 }
 0x11b   :  { %v1391_v46 = vmin.u32 %v611_v15, %v2257_v10  ;;  %vm742_vm10 = vcmp.lt.s32.totalorder %v741_v63, 2  ;;  %vm948_vm11 = vcmask 523264   ;;  %v140_v32 = vand.u32 8388607, %v133_v19  ;;  %v1580_v15 = vld [vmem:[#allocation2] sm:$0xff]  }
 0x11c   :  { %v150_v17 = vshll.u32 %v2509_v58, %v1900_v9  ;;  %v320_v0 = vxor.u32 2147483648, %v319_v14  ;;  %vm743_vm12 = vcmp.eq.s32.totalorder %v741_v63, 0  ;;  %v153_v37 = vshll.u32 %v2510_v23, %v1900_v9  ;;  %v1627_v54 = vpop.eup %1626 }
 0x11d   :  { %v154_v51 = vshrl.u32 %v2511_v7, %v1907_v16  ;;  %v2521_v30 = vand.u32 2147483647, %v1879_v43  ;;  %v613_v41 = vclz %v1391_v46  ;;  %v440_v53 = vsel %vm433_vm6, %v436_v25, %v439_v33  ;;  %v1629_v36 = vpop.eup %1628 }
 0x11e   :  { %vm746_vm14 = vcmp.eq.s32.totalorder %v741_v63, 2  ;;  %v152_v4 = vor.u32 %v151_v45, %v150_v17  ;;  %v747_v12 = vxor.u32 2147483648, %v1627_v54  ;;  %v156_v61 = vshll.u32 %v2511_v7, %v1900_v9  ;;  %v1597_v63 = vld [vmem:[%s2488_s1 + $0x4] ss:$8 sps:$4 sm:$0xff]  }
 0x11f   :  { %vm2278_vm13 = vcmp.le.f32.partialorder %v2521_v30, 0.7853982  ;;  %v155_v52 = vor.u32 %v154_v51, %v153_v37  ;;  %v157_v1 = vshrl.u32 %v2512_v26, %v1907_v16  ;;  %v1392_v3 = vadd.s32 4294967294, %v613_v41  ;;  %v1581_v17 = vld [vmem:[#allocation2 + $0x48] sm:$0xff]  }
 0x120   :  { %v744_v6 = vxor.u32 2147483648, %v1629_v36  ;;  %v141_v62 = vor.u32 8388608, %v140_v32  ;;  %v149_v21 = vshrl.u32 %v2509_v58, %v1907_v16  ;;  %v321_v49 = vsel %vm238_vm4, %v320_v0, %v319_v14 }
 0x121   :  { %v441_v20 = vsel %vm431_vm5, nan, %v440_v53  ;;  %v748_v22 = vsel %vm746_vm14, %v747_v12, %v1629_v36  ;;  %v158_v38 = vor.u32 %v157_v1, %v156_v61  ;;  %vm1393_vm15 = vcmp.lt.s32.totalorder %v1392_v3, 0 }
 0x122   :  { %v745_v9 = vsel %vm743_vm12, %v1627_v54, %v744_v6  ;;  %vm165_vm1 = vcmp.lt.s32.totalorder %v2093_v47, 1  ;;  %vm167_vm2 = vcmp.lt.s32.totalorder %v2093_v47, 3  ;;  %v616_v24 = vsel %vm1393_vm15, 0, %v1392_v3 }
 0x123   :  { %v749_v40 = vsel %vm742_vm10, %v745_v9, %v748_v22  ;;  %v173_v16 = vsel %vm165_vm1, %v152_v4, %v155_v52  ;;  %v175_v44 = vsel %vm167_vm2, %v158_v38, %v2228_v18  ;;  %v617_v14 = vsub.s32 32, %v616_v24 }
 0x124   :  { %v621_v25 = vsub.s32 4294967266, %v616_v24  ;;  %v750_v33 = vsel %vm740_vm9, nan, %v749_v40  ;;  %vm166_vm5 = vcmp.lt.s32.totalorder %v2093_v47, 2  ;;  %v618_v45 = vshll.u32 %v2257_v10, %v616_v24  ;;  %v1585_v24 = vld [vmem:[#allocation2 + $0x58] sm:$0xff]  }
 0x125   :  { %v753_v46 = vpack.c.bf16 %v750_v33, %v441_v20  ;;  %v170_v32 = vsel %vm168_vm0, %v158_v38, 2102212464  ;;  %v177_v18 = vsel %vm165_vm1, %v155_v52, %v158_v38  ;;  %v619_v0 = vshrl.u32 %v601_v39, %v617_v14 }
 0x126   :  { %v622_v37 = vadd.s32 127, %v621_v25  ;;  %v176_v2 = vsel %vm166_vm5, %v173_v16, %v175_v44  ;;  %v179_v51 = vsel %vm167_vm2, %v2188_v59, %v2240_v35  ;;  %v324_v10 = vsel %vm2278_vm13, %v1879_v43, %v321_v49  ;;  %v1582_v35 = vld [vmem:[#allocation2 + $0x8] sm:$0xff]  }
 0x127   :  { %1512 = vmatmul.mubr.msk.bf16.vlgmr.msra.gmra.mrb[0].mxu1 %vm948_vm11, %v753_v46  ;;  %v169_v54 = vsel %vm165_vm1, %v149_v21, %v152_v4  ;;  %v180_v39 = vsel %vm166_vm5, %v177_v18, %v179_v51  ;;  %v181_v30 = vshll.u32 %v141_v62, 8  ;;  %v620_v41 = vor.u32 %v619_v0, %v618_v45  ;;  %v1583_v4 = vld [vmem:[#allocation2 + $0x50] sm:$0xff]  }
 0x128   :  { %v623_v53 = vshll.u32 %v622_v37, 23  ;;  %1482 = vmatpush3.bf16.msra.mxu1 %v1580_v15  ;;  %v171_v36 = vsel %vm167_vm2, %v155_v52, %v170_v32  ;;  %v442_v59 = vand.u32 2147483647, %v1887_v56  ;;  %1172 = vmatprep.mubr.bf16.mxu1 %v1597_v63  ;;  %1630 = vcosq.f32 %v324_v10 }
 0x129   :  { %v2330_v12 = vmul.u32.u64.low %v181_v30, %v180_v39  ;;  %v2331_v61 = vmul.u32.u64.high %v181_v30, %v180_v39, %v2330_v12  ;;  %v2333_v1 = vmul.u32.u64.low %v181_v30, %v176_v2  ;;  %v2334_v3 = vmul.u32.u64.high %v181_v30, %v176_v2, %v2333_v1  ;;  %1483 = vmatprep.subr.bf16.mxu1 %v1581_v17 }
 0x12a   :  { %vm547_vm0 = vcmp.lt.s32.totalorder %v1889_v57, 0  ;;  %v624_v6 = vor.u32 4788187, %v623_v53  ;;  %v631_v62 = vsub.s32 4, %v2230_v50  ;;  %v2343_v52 = vsel %vm238_vm4, %v322_v55, %v2125_v31  ;;  %v1584_v31 = vld [vmem:[#allocation2 + $0x10] sm:$0xff]   ;;  %v1589_v53 = vld [vmem:[#allocation2 + $0x68] sm:$0xff]  }
 0x12b   :  { %1632 = vsinq.f32 %v324_v10  ;;  %vm2347_vm6 = vcmp.le.f32.partialorder %v545_v34, 0.7853982  ;;  %v172_v49 = vsel %vm166_vm5, %v169_v54, %v171_v36  ;;  %v627_v22 = vcvt.s32.f32 %v620_v41 }
 0x12c   :  { %v625_v20 = vand.u32 2147483647, %v624_v6  ;;  %v449_v38 = vand.u32 8388607, %v442_v59  ;;  %v460_v9 = vshrl.u32 %v2510_v23, %v1954_v29  ;;  %1484 = vmatpush3.bf16.msra.mxu1 %v1582_v35  ;;  %v2358_v55 = vadd.s32 %v2333_v1, %v2331_v61 }
 0x12d   :  { %vm190_vm4 = vc.u32 %v2331_v61, %v2333_v1  ;;  %v191_v34 = vadd.s32 1, %v2334_v3  ;;  %v459_v47 = vshll.u32 %v2509_v58, %v1943_v13  ;;  %1485 = vmatprep.subr.bf16.mxu1 %v1583_v4  ;;  %v325_v40 = vsel %vm2278_vm13, 0, %v2343_v52 }
 0x12e   :  { %v628_v15 = vmul.f32 %v627_v22, %v625_v20  ;;  %v632_v16 = vsel %vm547_vm0, %v631_v62, %v2230_v50  ;;  %v188_v44 = vmul.u32 %v181_v30, %v172_v49  ;;  %v462_v33 = vshll.u32 %v2510_v23, %v1943_v13  ;;  %v1586_v50 = vld [vmem:[#allocation2 + $0x18] sm:$0xff]   ;;  %v1587_v23 = vld [vmem:[#allocation2 + $0x60] sm:$0xff]   ;;  %v1590_v62 = vld [vmem:[#allocation2 + $0x28] sm:$0xff]  }
 0x12f   :  { %v192_v14 = vsel %vm190_vm4, %v191_v34, %v2334_v3  ;;  %v461_v25 = vor.u32 %v460_v9, %v459_v47  ;;  %v463_v63 = vshrl.u32 %v2511_v7, %v1954_v29  ;;  %v465_v11 = vshll.u32 %v2511_v7, %v1943_v13  ;;  %v1591_v22 = vld [vmem:[#allocation2 + $0x70] sm:$0xff]  }
 0x130   :  { %v629_v45 = vxor.u32 2147483648, %v628_v15  ;;  %v193_v46 = vadd.s32 %v192_v14, %v188_v44  ;;  %v466_v32 = vshrl.u32 %v2512_v26, %v1954_v29  ;;  %1486 = vmatpush3.bf16.msra.mxu1 %v1584_v31  ;;  %v450_v18 = vor.u32 8388608, %v449_v38 }
 0x131   :  { %v464_v17 = vor.u32 %v463_v63, %v462_v33  ;;  %vm474_vm7 = vcmp.lt.s32.totalorder %v2210_v60, 1  ;;  %vm476_vm8 = vcmp.lt.s32.totalorder %v2210_v60, 3  ;;  %1487 = vmatprep.subr.bf16.mxu1 %v1585_v24  ;;  %v458_v26 = vshrl.u32 %v2509_v58, %v1954_v29 }
 0x132   :  { %v630_v0 = vsel %vm547_vm0, %v629_v45, %v628_v15  ;;  %v194_v37 = vadd.s32 536870912, %v193_v46  ;;  %v467_v2 = vor.u32 %v466_v32, %v465_v11  ;;  %v488_v13 = vsel %vm476_vm8, %v2213_v48, %v2253_v8  ;;  %v1631_v10 = vpop.eup %1630  ;;  %v1588_v8 = vld [vmem:[#allocation2 + $0x20] sm:$0xff]  }
 0x133   :  { %v633_v7 = vsel %vm2347_vm6, %v1889_v57, %v630_v0  ;;  %vm475_vm9 = vcmp.lt.s32.totalorder %v2210_v60, 2  ;;  %v482_v51 = vsel %vm474_vm7, %v461_v25, %v464_v17  ;;  %v490_v41 = vshll.u32 %v450_v18, 8  ;;  %v1592_v60 = vld [vmem:[#allocation2 + $0x30] sm:$0xff]   ;;  %v1594_v18 = vld [vmem:[#allocation2 + $0x38] sm:$0xff]  }
 0x134   :  { %1634 = vcosq.f32 %v633_v7  ;;  %v2395_v54 = vshrl.u32 %v194_v37, 30  ;;  %v479_v39 = vsel %vm477_vm3, %v467_v2, 2102212464  ;;  %v484_v48 = vsel %vm476_vm8, %v467_v2, %v2245_v5  ;;  %1488 = vmatpush3.bf16.msra.mxu1 %v1586_v50 }
 0x135   :  { %v1633_v30 = vpop.eup %1632  ;;  %1636 = vsinq.f32 %v633_v7  ;;  %v485_v29 = vsel %vm475_vm9, %v482_v51, %v484_v48  ;;  %v486_v58 = vsel %vm474_vm7, %v464_v17, %v467_v2  ;;  %1489 = vmatprep.subr.bf16.mxu1 %v1587_v23  ;;  %v478_v35 = vsel %vm474_vm7, %v458_v26, %v461_v25  ;;  %v1595_v7 = vld [vmem:[%s2488_s1] ss:$8 sps:$4 sm:$0xff]  }
 0x136   :  { %v196_v36 = vshll.u32 %v2395_v54, 30  ;;  %v480_v5 = vsel %vm476_vm8, %v464_v17, %v479_v39  ;;  %v489_v12 = vsel %vm475_vm9, %v486_v58, %v488_v13  ;;  %v329_v52 = vand.u32 3, %v325_v40 }
 0x137   :  { %v2413_v61 = vmul.u32.u64.low %v490_v41, %v489_v12  ;;  %v2414_v1 = vmul.u32.u64.high %v490_v41, %v489_v12, %v2413_v61  ;;  %v2416_v3 = vmul.u32.u64.low %v490_v41, %v485_v29  ;;  %v2417_v4 = vmul.u32.u64.high %v490_v41, %v485_v29, %v2416_v3 }
 0x138   :  { %v2419_v6 = vsub.s32 %v193_v46, %v196_v36  ;;  %1490 = vmatpush3.bf16.msra.mxu1 %v1588_v8  ;;  %v634_v49 = vsel %vm2347_vm6, 0, %v632_v16  ;;  %v481_v20 = vsel %vm475_vm9, %v478_v35, %v480_v5  ;;  %v332_v38 = vxor.u32 2147483648, %v1633_v30  ;;  %v1593_v16 = vld [vmem:[#allocation2 + $0x78] sm:$0xff]  }
 0x139   :  { %1491 = vmatprep.subr.bf16.mxu1 %v1589_v53  ;;  %v335_v9 = vxor.u32 2147483648, %v1631_v10  ;;  %v2427_v34 = vadd.s32 %v2416_v3, %v2414_v1  ;;  %vm499_vm3 = vc.u32 %v2414_v1, %v2416_v3  ;;  %v500_v47 = vadd.s32 1, %v2417_v4 }
 0x13a   :  { %v199_v31 = vsub.s32 0, %v2419_v6  ;;  %v638_v24 = vand.u32 3, %v634_v49  ;;  %v497_v40 = vmul.u32 %v490_v41, %v481_v20  ;;  %vm331_vm10 = vcmp.eq.s32.totalorder %v329_v52, 0 }
 0x13b   :  { %vm334_vm11 = vcmp.eq.s32.totalorder %v329_v52, 2  ;;  %v501_v15 = vsel %vm499_vm3, %v500_v47, %v2417_v4  ;;  %v333_v14 = vsel %vm331_vm10, %v1631_v10, %v332_v38  ;;  %vm330_vm12 = vcmp.lt.s32.totalorder %v329_v52, 2 }
 0x13c   :  { %v1375_v21 = vmin.u32 %v199_v31, %v2419_v6  ;;  %1492 = vmatpush3.bf16.msra.mxu1 %v1590_v62  ;;  %v336_v25 = vsel %vm334_vm11, %v335_v9, %v1633_v30  ;;  %v502_v63 = vadd.s32 %v501_v15, %v497_v40  ;;  %vm643_vm13 = vcmp.eq.s32.totalorder %v638_v24, 2 }
 0x13d   :  { %1493 = vmatprep.subr.bf16.mxu1 %v1591_v22  ;;  %v337_v17 = vsel %vm330_vm12, %v333_v14, %v336_v25  ;;  %vm640_vm14 = vcmp.eq.s32.totalorder %v638_v24, 0  ;;  %vm639_vm15 = vcmp.lt.s32.totalorder %v638_v24, 2  ;;  %vm328_vm2 = vweird.f32 %v1879_v43 }
 0x13e   :  { %v1635_v44 = vpop.eup %1634  ;;  %v201_v33 = vclz %v1375_v21  ;;  %v503_v50 = vadd.s32 536870912, %v502_v63  ;;  %vm637_vm5 = vweird.f32 %v1889_v57  ;;  %v338_v26 = vsel %vm328_vm2, nan, %v337_v17 }
 0x13f   :  { %v1637_v45 = vpop.eup %1636  ;;  %v644_v46 = vxor.u32 2147483648, %v1635_v44  ;;  %vm135_vm0 = vcmp.lt.s32.totalorder %v1877_v42, 0  ;;  %vm2446_vm4 = vcmp.le.f32.partialorder %v133_v19, 0.7853982  ;;  %v219_v62 = vsub.s32 4, %v2395_v54 }
 0x140   :  { %v641_v11 = vxor.u32 2147483648, %v1637_v45  ;;  %v1376_v32 = vadd.s32 4294967294, %v201_v33  ;;  %1494 = vmatpush3.bf16.msra.mxu1 %v1592_v60  ;;  %v2433_v37 = vshrl.u32 %v503_v50, 30  ;;  %vm443_vm8 = vcmp.le.f32.partialorder %v442_v59, 0.7853982 }
 0x141   :  { %v645_v23 = vsel %vm643_vm13, %v644_v46, %v1637_v45  ;;  %1495 = vmatprep.subr.bf16.mxu1 %v1593_v16  ;;  %v220_v19 = vsel %vm135_vm0, %v219_v62, %v2395_v54  ;;  %vm444_vm9 = vcmp.lt.s32.totalorder %v1887_v56, 0 }
 0x142   :  { %v642_v0 = vsel %vm640_vm14, %v1635_v44, %v641_v11  ;;  %vm1377_vm1 = vcmp.lt.s32.totalorder %v1376_v32, 0  ;;  %v505_v8 = vshll.u32 %v2433_v37, 30  ;;  %v222_v21 = vsel %vm2446_vm4, 0, %v220_v19 }
 0x143   :  { %v646_v2 = vsel %vm639_vm15, %v642_v0, %v645_v23  ;;  %v204_v13 = vsel %vm1377_vm1, 0, %v1376_v32  ;;  %v226_v16 = vand.u32 3, %v222_v21  ;;  %v528_v46 = vsub.s32 4, %v2433_v37 }
 0x144   :  { %v647_v51 = vsel %vm637_vm5, nan, %v646_v2  ;;  %v205_v10 = vsub.s32 32, %v204_v13  ;;  %v209_v39 = vsub.s32 4294967266, %v204_v13  ;;  %1496 = vmatpush3.bf16.msra.mxu1 %v1594_v18  ;;  %v206_v30 = vshll.u32 %v2419_v6, %v204_v13 }
 0x145   :  { %v752_v48 = vpack.c.bf16 %v647_v51, %v338_v26  ;;  %v506_v57 = vsub.s32 %v502_v63, %v505_v8  ;;  %vm231_vm7 = vcmp.eq.s32.totalorder %v226_v16, 2  ;;  %vm228_vm3 = vcmp.eq.s32.totalorder %v226_v16, 0  ;;  %v1598_v8 = vld [vmem:[#allocation7] ss:$8 sps:$4 sm:$0xff]  }
 0x146   :  { %v207_v43 = vshrl.u32 %v2358_v55, %v205_v10  ;;  %v210_v29 = vadd.s32 127, %v209_v39  ;;  %vm227_vm10 = vcmp.lt.s32.totalorder %v226_v16, 2  ;;  %v529_v18 = vsel %vm444_vm9, %v528_v46, %v2433_v37 }
 0x147   :  { %984 = vmatprep.mubr.bf16.mxu0 %v752_v48  ;;  %1173 = vmatmul.mubr.bf16.vlgmr.msra.gmra.mrb[4].mxu1 %v1595_v7  ;;  %v508_v53 = vsub.s32 0, %v506_v57  ;;  %v531_v17 = vsel %vm443_vm8, 0, %v529_v18  ;;  %vm225_vm14 = vweird.f32 %v1877_v42  ;;  %vm534_vm15 = vweird.f32 %v1887_v56 }
 0x148   :  { %v208_v58 = vor.u32 %v207_v43, %v206_v30  ;;  %v211_v41 = vshll.u32 %v210_v29, 23  ;;  %v535_v23 = vand.u32 3, %v531_v17  ;;  %v2528_v37 = vmov 0   ;;  %v1600_v30 = vld [vmem:[#allocation7 + $0x4] ss:$8 sps:$4 sm:$0xff]  }
 0x149   :  { %v1387_v35 = vmin.u32 %v508_v53, %v506_v57  ;;  %1309 = vmatprep.subr.bf16.mxu0 %v1600_v30  ;;  %v1601_v43 = vld [vmem:[#allocation7 + $0x10] ss:$8 sps:$4 sm:$0xff]   ;;  %v1603_v29 = vld [vmem:[#allocation7 + $0x14] ss:$8 sps:$4 sm:$0xff]   ;;  %v1610_v53 = vld [vmem:[#allocation7 + $0x40] ss:$8 sps:$4 sm:$0xff]  }
 0x14a   :  { %v212_v36 = vor.u32 4788187, %v211_v41  ;;  %v215_v12 = vcvt.s32.f32 %v208_v58  ;;  %vm540_vm11 = vcmp.eq.s32.totalorder %v535_v23, 2  ;;  %vm537_vm12 = vcmp.eq.s32.totalorder %v535_v23, 0  ;;  %v1604_v58 = vld [vmem:[#allocation7 + $0x20] ss:$8 sps:$4 sm:$0xff]  }
 0x14b   :  { %v510_v61 = vclz %v1387_v35  ;;  %vm536_vm13 = vcmp.lt.s32.totalorder %v535_v23, 2  ;;  %v1612_v41 = vld [vmem:[#allocation7 + $0x44] ss:$8 sps:$4 sm:$0xff]   ;;  %v1613_v35 = vld [vmem:[#allocation7 + $0x50] ss:$8 sps:$4 sm:$0xff]  }
 0x14c   :  { %v213_v5 = vand.u32 2147483647, %v212_v36  ;;  %v1615_v36 = vld [vmem:[#allocation7 + $0x54] ss:$8 sps:$4 sm:$0xff]   ;;  %v1217_v23 = vld [vmem:[%s2495_s8] sm:$0x3] }
 0x14d   :  { %v1388_v3 = vadd.s32 4294967294, %v510_v61  ;;  %s1716_s8 = scalar_lea.vmem %s1362_s16, 512 }
 0x14e   :  { %v216_v1 = vmul.f32 %v215_v12, %v213_v5  ;;  %v1618_v5 = vld [vmem:[#allocation7 + $0x64] ss:$8 sps:$4 sm:$0xff]   ;;  %v1616_v12 = vld [vmem:[#allocation7 + $0x60] ss:$8 sps:$4 sm:$0xff]   ;;  %p1717_p10 = scmp.ne.s32.totalorder %s1362_s16, %s1716_s8  ;;  %p1722_p12 = scmp.lt.s32.totalorder %s1716_s8, %s1716_s8 }
 0x14f   :  { %vm1389_vm6 = vcmp.lt.s32.totalorder %v1388_v3, 0 }
 0x150   :  { %v217_v4 = vxor.u32 2147483648, %v216_v1  ;;  %v513_v52 = vsel %vm1389_vm6, 0, %v1388_v3  ;;  %p1723_p13 = por %p1722_p12, %p1721_p11 }
 0x151   :  { %v514_v20 = vsub.s32 32, %v513_v52  ;;  %v518_v22 = vsub.s32 4294967266, %v513_v52  ;;  %v515_v38 = vshll.u32 %v506_v57, %v513_v52  ;;  %v1606_v57 = vld [vmem:[#allocation7 + $0x24] ss:$8 sps:$4 sm:$0xff]  }
 0x152   :  { %v218_v6 = vsel %vm135_vm0, %v217_v4, %v216_v1  ;;  %v1621_v1 = vld [vmem:[#allocation7 + $0x74] ss:$8 sps:$4 sm:$0xff]   ;;  %p1724_p0 = pnand %p1723_p13, %p1717_p10 }
 0x153   :  { %v221_v49 = vsel %vm2446_vm4, %v1877_v42, %v218_v6  ;;  %v516_v9 = vshrl.u32 %v2427_v34, %v514_v20  ;;  %v519_v31 = vadd.s32 127, %v518_v22  ;;  %v1609_v42 = vld [vmem:[#allocation7 + $0x34] ss:$8 sps:$4 sm:$0xff]   ;;  %v1619_v6 = vld [vmem:[#allocation7 + $0x70] ss:$8 sps:$4 sm:$0xff]  }
 0x154   :  { %1638 = vcosq.f32 %v221_v49 }
 0x155   :  { %1640 = vsinq.f32 %v221_v49  ;;  %v517_v47 = vor.u32 %v516_v9, %v515_v38  ;;  %v520_v24 = vshll.u32 %v519_v31, 23 }
 0x157   :  { %v521_v40 = vor.u32 4788187, %v520_v24  ;;  %v524_v15 = vcvt.s32.f32 %v517_v47 }
 0x159   :  { %v522_v60 = vand.u32 2147483647, %v521_v40 }
 0x15b   :  { %v525_v44 = vmul.f32 %v524_v15, %v522_v60  ;;  %v1437_v60 = vld [vmem:[%s2493_s6] ss:$0 sm:$0xff] }
 0x15d   :  { %v526_v63 = vxor.u32 2147483648, %v525_v44 }
 0x15e   :  { %v1639_v14 = vpop.eup %1638 }
 0x15f   :  { %v1641_v25 = vpop.eup %1640  ;;  %v232_v33 = vxor.u32 2147483648, %v1639_v14  ;;  %v527_v34 = vsel %vm444_vm9, %v526_v63, %v525_v44 }
 0x160   :  { %v229_v45 = vxor.u32 2147483648, %v1641_v25  ;;  %v530_v32 = vsel %vm443_vm8, %v1887_v56, %v527_v34  ;;  %v1607_v56 = vld [vmem:[#allocation7 + $0x30] ss:$8 sps:$4 sm:$0xff]  }
 0x161   :  { %v233_v54 = vsel %vm231_vm7, %v232_v33, %v1641_v25  ;;  %1642 = vcosq.f32 %v530_v32 }
 0x162   :  { %v230_v11 = vsel %vm228_vm3, %v1639_v14, %v229_v45  ;;  %1644 = vsinq.f32 %v530_v32 }
 0x163   :  { %v234_v50 = vsel %vm227_vm10, %v230_v11, %v233_v54 }
 0x164   :  { %v235_v10 = vsel %vm225_vm14, nan, %v234_v50 }
 0x16b   :  { %v1643_v0 = vpop.eup %1642 }
 0x16c   :  { %v1645_v59 = vpop.eup %1644  ;;  %v541_v2 = vxor.u32 2147483648, %v1643_v0 }
 0x16d   :  { %v538_v13 = vxor.u32 2147483648, %v1645_v59 }
 0x16e   :  { %v542_v7 = vsel %vm540_vm11, %v541_v2, %v1645_v59  ;;  %v1226_v59 = vrot.slane %v1217_v23, %v1865_v28 }
 0x16f   :  { %v539_v26 = vsel %vm537_vm12, %v1643_v0, %v538_v13  ;;  %v1222_v0 = vrot.slane %v1217_v23, %v1863_v27 }
 0x170   :  { %v543_v51 = vsel %vm536_vm13, %v539_v26, %v542_v7 }
 0x171   :  { %v544_v39 = vsel %vm534_vm15, nan, %v543_v51 }
 0x172   :  { %v751_v48 = vpack.c.bf16 %v544_v39, %v235_v10 }
 0x174   :  { %985 = vmatmul.mubr.bf16.vlgmr.msra.gmra.mrb[0].mxu0 %v751_v48 }
 0x175   :  { %1341 = vmatprep.mubr.bf16.mxu0 %v2528_v37  ;;  %1310 = vmatpush1.bf16.msra.mxu0 %v1598_v8 }
 0x176   :  { %1311 = vmatprep.subr.bf16.mxu0 %v1603_v29 }
 0x179   :  { %1312 = vmatpush1.bf16.msra.mxu0 %v1601_v43 }
 0x17a   :  { %1313 = vmatprep.subr.bf16.mxu0 %v1606_v57 }
 0x17d   :  { %1314 = vmatpush1.bf16.msra.mxu0 %v1604_v58 }
 0x17e   :  { %1315 = vmatprep.subr.bf16.mxu0 %v1609_v42 }
 0x181   :  { %1316 = vmatpush1.bf16.msra.mxu0 %v1607_v56 }
 0x182   :  { %1317 = vmatprep.subr.bf16.mxu0 %v1612_v41 }
 0x185   :  { %1318 = vmatpush1.bf16.msra.mxu0 %v1610_v53 }
 0x186   :  { %1319 = vmatprep.subr.bf16.mxu0 %v1615_v36 }
 0x189   :  { %1320 = vmatpush1.bf16.msra.mxu0 %v1613_v35 }
 0x18a   :  { %1321 = vmatprep.subr.bf16.mxu0 %v1618_v5 }
 0x18d   :  { %1322 = vmatpush1.bf16.msra.mxu0 %v1616_v12 }
 0x18e   :  { %1323 = vmatprep.subr.bf16.mxu0 %v1621_v1 }
 0x191   :  { %1324 = vmatpush1.bf16.msra.mxu0 %v1619_v6 }
 0x1fa   :  { %v1027_v61 = vpop.f32.mrb[0].mxu1 }
 0x1fb   :  { %v1513_v3 = vpop.f32.mrb[1].mxu1 }
 0x1fc   :  { %v1030_v4 = vpop.f32.mrb[2].mxu1 }
 0x1fd   :  { %v1514_v55 = vpop.f32.mrb[3].mxu1 }
 0x21a   :  { %v1497_v62 = vpop.f32.mrb[4].mxu1 }
 0x21b   :  { %v1498_v52 = vpop.f32.mrb[5].mxu1 }
 0x21c   :  { %v1499_v49 = vadd.f32 %v1498_v52, %v1497_v62  ;;  %v1500_v20 = vpop.f32.mrb[6].mxu1 }
 0x21d   :  { %v1501_v22 = vpop.f32.mrb[7].mxu1 }
 0x21e   :  { %v1502_v38 = vadd.f32 %v1501_v22, %v1500_v20 }
 0x247   :  { %v1470_v9 = vpop.f32.mrb[0].mxu0 }
 0x248   :  { %v1471_v31 = vpop.f32.mrb[1].mxu0 }
 0x249   :  { %v1472_v19 = vadd.f32 %v1471_v31, %v1470_v9  ;;  %v1473_v47 = vpop.f32.mrb[2].mxu0 }
 0x24a   :  { %v1474_v24 = vpop.f32.mrb[3].mxu0 }
 0x24b   :  { %v1028_v21 = vadd.f32 %v1472_v19, %v1027_v61  ;;  %v1475_v40 = vadd.f32 %v1474_v24, %v1473_v47 }
 0x24d   :  { %v1031_v15 = vadd.f32 %v1475_v40, %v1030_v4  ;;  %v1175_v16 = vadd.f32 %v1499_v49, %v1028_v21 }
 0x24f   :  { %v1188_v44 = vadd.f32 %v1437_v60, %v1175_v16  ;;  %v1178_v14 = vadd.f32 %v1502_v38, %v1031_v15 }
 0x251   :  { %v1190_v25 = vmul.f32 0.5, %v1188_v44  ;;  %v1189_v33 = vadd.f32 %v1437_v60, %v1178_v14 }
 0x253   :  { %1646 = vtanh.f32 %v1190_v25  ;;  %v1191_v63 = vmul.f32 0.5, %v1189_v33 }
 0x255   :  { %1648 = vtanh.f32 %v1191_v63 }
 0x25d   :  { %v1647_v45 = vpop.eup %1646 }
 0x25e   :  { %v1194_v54 = vmul.f32 0.5, %v1647_v45 }
 0x25f   :  { %v1649_v34 = vpop.eup %1648 }
 0x260   :  { %v1196_v46 = vadd.f32 0.5, %v1194_v54  ;;  %v1195_v11 = vmul.f32 0.5, %v1649_v34 }
 0x262   :  { %v1197_v32 = vadd.f32 0.5, %v1195_v11  ;;  %v1198_v50 = vmul.f32 %v1196_v46, %v1188_v44 }
 0x264   :  { %v1199_v18 = vmul.f32 %v1197_v32, %v1189_v33 }
 0x266   :  { %v1200_v17 = vpack.c.bf16 %v1199_v18, %v1198_v50 }
 0x268   :  { %1342 = vmatmul.mubr.bf16.vlgmr.msra.gmra.mrb[4].mxu0 %v1200_v17 }
 0x33b   :  { %v1343_v2 = vpop.f32.mrb[4].mxu0 }
 0x33c   :  { %v1344_v13 = vadd.f32 %v1343_v2, %v1222_v0  ;;  %v1345_v7 = vpop.f32.mrb[5].mxu0 }
 0x33d   :  { %v1346_v26 = vadd.f32 %v1345_v7, %v1226_v59  ;;  %v1347_v51 = vpop.f32.mrb[6].mxu0 }
 0x33e   :  { %1352 = vst [vmem:[#allocation8] sm:$0xff] %v1344_v13  ;;  %v1348_v10 = vadd.f32 %v1347_v51, %v1222_v0  ;;  %v1349_v39 = vpop.f32.mrb[7].mxu0 }
 0x33f   :  { %1353 = vst [vmem:[#allocation8 + $0x8] sm:$0xff] %v1346_v26  ;;  %v1350_v48 = vadd.f32 %v1349_v39, %v1226_v59 }
 0x340   :  { %1354 = vst [vmem:[#allocation8 + $0x10] sm:$0xff] %v1348_v10 }
 0x341   :  { %1355 = vst [vmem:[#allocation8 + $0x18] sm:$0xff] %v1350_v48 }
 0x342   :  { %1727 = shalt.err (!%p1724_p0)
}
 0x343   :  { %s1728_s19 = scalar_lea.hbm %s2496_s9, 512 }
 0x344   :  { %p1729_p1 = scmp.ne.s32.totalorder %s2496_s9, %s1728_s19  ;;  %p1732_p2 = scmp.lt.u32.totalorder %s1728_s19, %s2496_s9 }
 0x346   :  { %p1734_p3 = pnand %p1732_p2, %p1729_p1 }
 0x348   :  { %1737 = shalt.err (!%p1734_p3)
}
 0x349   :  { %s1761_s4 = smov 256   ;;  %s1762_s12 = smov 16  }
 0x34a   :  { %1367 = dma.vmem_to_hbm [thread:$0]  %s1362_s16, 512, %s2496_s9, [#allocation4], %s1761_s4, %s1761_s4, %s1762_s12  }
 0x34b   :  { %1742 = dma.done.wait [#allocation4], 512  }
 0x34c   :  { %1743 = vsyncadd [#allocation4], 4294966784 }
 0x34d   :  { %1371 = vsyncpa [#allocation3], 1 }
 0x34e   :  { %1372 = vsyncpa [#allocation6], 1 }
 0x34f   :  { %1373 = vsyncpa [#allocation4], 1 }

// kernel: tpu_custom_call.1
= control target key start
LH: loop header
LB: loop body
LE: loop exit
PB: predicated region body
PF: predicated region fallthrough
CT: control target
= control target key end

     0   :  { %14 = vsyncpa [#allocation3], 0  ;;  %s2487_s0 = inlined_call_operand.vmem [shape: f32[16,1], index: 0, kind: input, shape index: {}]   ;;  %s2488_s1 = inlined_call_operand.vmem [shape: bf16[16,256], index: 1, kind: input, shape index: {}]   ;;  %s2489_s2 = inlined_call_operand.vmem [shape: f32[1,320], index: 2, kind: input, shape index: {}]   ;;  %s2490_s3 = inlined_call_operand.vmem [shape: f32[1,320], index: 3, kind: input, shape index: {}]   ;;  %s2491_s4 = inlined_call_operand.hbm [shape: bf16[256,128], index: 4, kind: input, shape index: {}]   ;;  %s2492_s5 = inlined_call_operand.hbm [shape: bf16[320,128], index: 5, kind: input, shape index: {}]   ;;  %s2493_s6 = inlined_call_operand.vmem [shape: f32[1,128], index: 6, kind: input, shape index: {}]   ;;  %s2494_s7 = inlined_call_operand.hbm [shape: bf16[128,256], index: 7, kind: input, shape index: {}]   ;;  %s2495_s8 = inlined_call_operand.vmem [shape: f32[1,256], index: 8, kind: input, shape index: {}]   ;;  %s2496_s9 = inlined_call_operand.hbm [shape: f32[16,256], index: 9, kind: output, shape index: {}]  }
   0x1   :  { %15 = vsyncpa [#allocation6], 0 }
   0x2   :  { %16 = vsyncpa [#allocation4], 0  ;;  %s1744_s30 = smov [#allocation5]   ;;  %s1745_s11 = smov [#allocation2]  }
   0x3   :  { %s42_s10 = sshll.u32 %s1744_s30, 4  ;;  %s30_s12 = sshll.u32 %s1745_s11, 4  ;;  %s43_s10 = int_to_ptr.vmem [resolvable:$true] %s42_s10  ;;  %s1813_s12 = int_to_ptr.vmem [resolvable:$true] %s30_s12 }
   0x4   :  { %s1650_s15 = scalar_lea.hbm %s2492_s5, 2560 }
   0x5   :  { %p1651_p0 = scmp.ne.s32.totalorder %s2492_s5, %s1650_s15  ;;  %p1654_p1 = scmp.lt.u32.totalorder %s1650_s15, %s2492_s5 }
   0x7   :  { %p1656_p2 = pnand %p1654_p1, %p1651_p0 }
   0x9   :  { %1659 = shalt.err (!%p1656_p2)
}
   0xa   :  { %s1660_s20 = scalar_lea.vmem %s43_s10, 2560  ;;  %p1665_p4 = scmp.lt.s32.totalorder %s43_s10, %s43_s10 }
   0xb   :  { %p1661_p3 = scmp.ne.s32.totalorder %s43_s10, %s1660_s20  ;;  %p1666_p5 = scmp.lt.s32.totalorder %s1660_s20, %s1660_s20 }
   0xd   :  { %p1667_p6 = por %p1666_p5, %p1665_p4 }
   0xf   :  { %p1668_p7 = pnand %p1667_p6, %p1661_p3 }
  0x11   :  { %1671 = shalt.err (!%p1668_p7)
}
  0x12   :  { %s1746_s21 = smov 64   ;;  %s1747_s22 = smov 4  }
  0x13   :  { %48 = dma.hbm_to_vmem [thread:$0]  %s2492_s5, 2560, %s43_s10, [#allocation6], %s1746_s21, %s1746_s21, %s1747_s22  }
  0x14   :  { %s1672_s27 = scalar_lea.hbm %s2491_s4, 2048 }
  0x15   :  { %p1673_p8 = scmp.ne.s32.totalorder %s2491_s4, %s1672_s27  ;;  %p1676_p9 = scmp.lt.u32.totalorder %s1672_s27, %s2491_s4 }
  0x17   :  { %p1678_p10 = pnand %p1676_p9, %p1673_p8 }
  0x19   :  { %1681 = shalt.err (!%p1678_p10)
}
  0x1a   :  { %s1682_s13 = scalar_lea.vmem %s1813_s12, 2048  ;;  %p1687_p12 = scmp.lt.s32.totalorder %s1813_s12, %s1813_s12 }
  0x1b   :  { %p1683_p11 = scmp.ne.s32.totalorder %s1813_s12, %s1682_s13  ;;  %p1688_p13 = scmp.lt.s32.totalorder %s1682_s13, %s1682_s13 }
  0x1d   :  { %p1689_p0 = por %p1688_p13, %p1687_p12 }
  0x1f   :  { %p1690_p1 = pnand %p1689_p0, %p1683_p11 }
  0x21   :  { %1693 = shalt.err (!%p1690_p1)
}
  0x22   :  { %36 = dma.hbm_to_vmem [thread:$0]  %s2491_s4, 2048, %s1813_s12, [#allocation3], %s1746_s21, %s1746_s21, %s1747_s22  }
  0x23   :  { %s1748_s14 = smov [#allocation7]   ;;  %s1694_s18 = scalar_lea.hbm %s2494_s7, 2048 }
  0x24   :  { %s56_s15 = sshll.u32 %s1748_s14, 4  ;;  %p1695_p2 = scmp.ne.s32.totalorder %s2494_s7, %s1694_s18  ;;  %s57_s15 = int_to_ptr.vmem [resolvable:$true] %s56_s15 }
  0x25   :  { %p1698_p3 = scmp.lt.u32.totalorder %s1694_s18, %s2494_s7 }
  0x27   :  { %p1700_p4 = pnand %p1698_p3, %p1695_p2 }
  0x29   :  { %1703 = shalt.err (!%p1700_p4)
}
  0x2a   :  { %s1704_s25 = scalar_lea.vmem %s57_s15, 2048  ;;  %p1709_p6 = scmp.lt.s32.totalorder %s57_s15, %s57_s15 }
  0x2b   :  { %p1705_p5 = scmp.ne.s32.totalorder %s57_s15, %s1704_s25  ;;  %p1710_p7 = scmp.lt.s32.totalorder %s1704_s25, %s1704_s25 }
  0x2d   :  { %p1711_p8 = por %p1710_p7, %p1709_p6 }
  0x2f   :  { %p1712_p9 = pnand %p1711_p8, %p1705_p5 }
  0x31   :  { %1715 = shalt.err (!%p1712_p9)
}
  0x32   :  { %s1749_s4 = smov 128   ;;  %s1750_s12 = smov 8  }
  0x33   :  { %62 = dma.hbm_to_vmem [thread:$0]  %s2494_s7, 2048, %s57_s15, [#allocation6], %s1749_s4, %s1749_s4, %s1750_s12  }
  0x34   :  { %1738 = dma.done.wait [#allocation3], 2048  }
  0x35   :  { %1739 = vsyncadd [#allocation3], 4294965248 }
  0x36   :  { %1740 = dma.done.wait [#allocation6], 4608  }
  0x37   :  { %1741 = vsyncadd [#allocation6], 4294962688  ;;  %v2497_v0 = vmov 0   ;;  %v75_v1 = vld [vmem:[%s2487_s0] sm:$0xff]  ;;  %v76_v2 = vld [vmem:[%s2487_s0 + $0x8] sm:$0xff]  ;;  %v1752_v12 = vmov 0.0   ;;  %v89_v25 = vlaneseq }
  0x38   :  { %1558 = vset.pattern.permute.xlu0 %v2497_v0  ;;  %v1559_v3 = vld [vmem:[#allocation5 + $0x40] sm:$0xff]   ;;  %v1561_v5 = vld [vmem:[#allocation5 + $0x48] sm:$0xff]   ;;  %v1563_v7 = vld [vmem:[#allocation5 + $0x50] sm:$0xff]   ;;  %1503 = vmatprep.subr.bf16.mxu1 %v1752_v12  ;;  %vm1753_vm0 = vmmov 0   ;;  %s1760_s15 = smov [#allocation8]  }
  0x39   :  { %80 = vperm.xlu0 %1558, %v75_v1   ;;  %v1560_v4 = vld [vmem:[#allocation5] sm:$0xff]   ;;  %1454 = vmatprep.subr.bf16.mxu0 %v1559_v3  ;;  %v1562_v6 = vld [vmem:[#allocation5 + $0x8] sm:$0xff]   ;;  %v1564_v8 = vld [vmem:[#allocation5 + $0x10] sm:$0xff]   ;;  %v90_v26 = vshrl.u32 %v89_v25, 7  ;;  %s1361_s16 = sshll.u32 %s1760_s15, 4  ;;  %s1362_s16 = int_to_ptr.vmem [resolvable:$true] %s1361_s16 }
  0x3a   :  { %1455 = vmatpush3.bf16.msra.mxu0 %v1560_v4  ;;  %v1565_v9 = vld [vmem:[#allocation5 + $0x58] sm:$0xff]   ;;  %v1567_v11 = vld [vmem:[#allocation5 + $0x80] sm:$0xff]   ;;  %1511 = vmatprep.mubr.msk.bf16.mxu1 %vm1753_vm0, %v1752_v12  ;;  %v1570_v14 = vld [vmem:[#allocation5 + $0x88] sm:$0xff]   ;;  %p1721_p11 = scmp.lt.s32.totalorder %s1362_s16, %s1362_s16 }
  0x3b   :  { %1456 = vmatprep.subr.bf16.mxu0 %v1561_v5  ;;  %v1566_v10 = vld [vmem:[#allocation5 + $0x18] sm:$0xff]   ;;  %v1568_v13 = vld [vmem:[#allocation5 + $0x60] sm:$0xff]   ;;  %1504 = vmatpush3.bf16.msra.mxu1 %v1567_v11  ;;  %v1571_v16 = vld [vmem:[#allocation5 + $0x68] sm:$0xff]   ;;  %v1863_v27 = vsub.s32 0, %v90_v26  ;;  %v1865_v28 = vsub.s32 1, %v90_v26  ;;  %v99_v29 = vsub.s32 2, %v90_v26 }
  0x3c   :  { %v1569_v15 = vld [vmem:[#allocation5 + $0x20] sm:$0xff]   ;;  %1505 = vmatprep.subr.bf16.mxu1 %v1752_v12  ;;  %v1573_v17 = vld [vmem:[#allocation5 + $0x90] sm:$0xff]   ;;  %v1572_v18 = vld [vmem:[#allocation5 + $0x28] sm:$0xff]  }
  0x3d   :  { %85 = vperm.xlu0 %1558, %v76_v2   ;;  %v1574_v19 = vld [vmem:[#allocation5 + $0x70] sm:$0xff]   ;;  %v1576_v20 = vld [vmem:[#allocation5 + $0x98] sm:$0xff]   ;;  %v1579_v22 = vld [vmem:[#allocation2 + $0x40] sm:$0xff]  }
  0x3e   :  { %1457 = vmatpush3.bf16.msra.mxu0 %v1562_v6  ;;  %v1575_v21 = vld [vmem:[#allocation5 + $0x30] sm:$0xff]   ;;  %v1577_v23 = vld [vmem:[#allocation5 + $0x78] sm:$0xff]   ;;  %v77_v30 = vld [vmem:[%s2489_s2] sm:$0x7] }
  0x3f   :  { %1458 = vmatprep.subr.bf16.mxu0 %v1563_v7  ;;  %1506 = vmatpush3.bf16.msra.mxu1 %v1570_v14  ;;  %v1578_v24 = vld [vmem:[#allocation5 + $0x38] sm:$0xff]   ;;  %v110_v31 = vld [vmem:[%s2490_s3] sm:$0x7]  ;;  %v92_v32 = vrot.slane %v77_v30, %v1863_v27  ;;  %v96_v33 = vrot.slane %v77_v30, %v1865_v28  ;;  %v100_v34 = vrot.slane %v77_v30, %v99_v29 }
  0x40   :  { %1507 = vmatprep.subr.bf16.mxu1 %v1752_v12  ;;  %v115_v35 = vrot.slane %v110_v31, %v1863_v27  ;;  %v119_v36 = vrot.slane %v110_v31, %v1865_v28  ;;  %v123_v37 = vrot.slane %v110_v31, %v99_v29 }
  0x42   :  { %1459 = vmatpush3.bf16.msra.mxu0 %v1564_v8 }
  0x43   :  { %1460 = vmatprep.subr.bf16.mxu0 %v1565_v9  ;;  %1508 = vmatpush3.bf16.msra.mxu1 %v1573_v17 }
  0x44   :  { %1509 = vmatprep.subr.bf16.mxu1 %v1752_v12 }
  0x46   :  { %1461 = vmatpush3.bf16.msra.mxu0 %v1566_v10 }
  0x47   :  { %1462 = vmatprep.subr.bf16.mxu0 %v1568_v13  ;;  %1510 = vmatpush3.bf16.msra.mxu1 %v1576_v20 }
  0x48   :  { %1481 = vmatprep.subr.bf16.mxu1 %v1579_v22 }
  0x4a   :  { %1463 = vmatpush3.bf16.msra.mxu0 %v1569_v15 }
  0x4b   :  { %1464 = vmatprep.subr.bf16.mxu0 %v1571_v16 }
  0x4e   :  { %1465 = vmatpush3.bf16.msra.mxu0 %v1572_v18 }
  0x4f   :  { %1466 = vmatprep.subr.bf16.mxu0 %v1574_v19  ;;  %v1754_v19 = vmov 920167782  }
  0x52   :  { %1467 = vmatpush3.bf16.msra.mxu0 %v1575_v21  ;;  %v1755_v21 = vmov 1326507024  }
  0x53   :  { %1468 = vmatprep.subr.bf16.mxu0 %v1577_v23 }
  0x56   :  { %1469 = vmatpush3.bf16.msra.mxu0 %v1578_v24 }
  0xb8   :  { %v81_v38 = vpop.permute.xlu0 %80 }
  0xb9   :  { %v104_v39 = vmul.f32 %v92_v32, %v81_v38  ;;  %v105_v40 = vmul.f32 %v96_v33, %v81_v38  ;;  %v106_v41 = vmul.f32 %v100_v34, %v81_v38  ;;  %v2503_v38 = vmov 2131351028  }
  0xbb   :  { %v1877_v42 = vadd.f32 %v115_v35, %v104_v39  ;;  %v1879_v43 = vadd.f32 %v119_v36, %v105_v40  ;;  %v1881_v44 = vadd.f32 %v123_v37, %v106_v41  ;;  %v2501_v41 = vmov 2102212464  }
  0xbc   :  { %v86_v45 = vpop.permute.xlu0 %85 }
  0xbd   :  { %v136_v46 = vand.u32 2139095040, %v1877_v42  ;;  %v239_v47 = vand.u32 2139095040, %v1879_v43  ;;  %v2499_v48 = vand.u32 2147483647, %v1881_v44  ;;  %v342_v49 = vand.u32 2139095040, %v1881_v44 }
  0xbe   :  { %v107_v50 = vmul.f32 %v92_v32, %v86_v45  ;;  %v108_v51 = vmul.f32 %v96_v33, %v86_v45  ;;  %v109_v54 = vmul.f32 %v100_v34, %v86_v45  ;;  %v2507_v32 = vmov 683565275  }
  0xbf   :  { %v137_v52 = vshrl.u32 %v136_v46, 23  ;;  %v240_v53 = vshrl.u32 %v239_v47, 23  ;;  %v343_v55 = vshrl.u32 %v342_v49, 23  ;;  %v346_v61 = vand.u32 8388607, %v2499_v48 }
  0xc0   :  { %v1887_v56 = vadd.f32 %v115_v35, %v107_v50  ;;  %v1889_v57 = vadd.f32 %v119_v36, %v108_v51  ;;  %v1894_v2 = vadd.f32 %v123_v37, %v109_v54  ;;  %v2505_v34 = vmov 2475754826  }
  0xc1   :  { %v1374_v58 = vadd.s32 4294967169, %v137_v52  ;;  %v1378_v59 = vadd.s32 4294967169, %v240_v53  ;;  %v1382_v60 = vadd.s32 4294967169, %v343_v55  ;;  %v347_v7 = vor.u32 8388608, %v346_v61 }
  0xc2   :  { %v445_v62 = vand.u32 2139095040, %v1887_v56  ;;  %v548_v3 = vand.u32 2139095040, %v1889_v57  ;;  %v2500_v11 = vand.u32 2147483647, %v1894_v2  ;;  %v651_v15 = vand.u32 2139095040, %v1894_v2 }
  0xc3   :  { %v143_v63 = vadd.s32 1, %v1374_v58  ;;  %v246_v1 = vadd.s32 1, %v1378_v59  ;;  %v349_v4 = vadd.s32 1, %v1382_v60  ;;  %v1909_v18 = vshll.u32 %v347_v7, 8 }
  0xc4   :  { %v446_v5 = vshrl.u32 %v445_v62, 23  ;;  %v549_v10 = vshrl.u32 %v548_v3, 23  ;;  %v1924_v24 = vand.u32 8388607, %v2500_v11  ;;  %v652_v30 = vshrl.u32 %v651_v15, 23 }
  0xc5   :  { %vm144_vm1 = vcmp.gt.s32.totalorder %v143_v63, 0  ;;  %vm247_vm2 = vcmp.gt.s32.totalorder %v246_v1, 0  ;;  %vm350_vm3 = vcmp.gt.s32.totalorder %v349_v4, 0 }
  0xc6   :  { %v1897_v6 = vsel %vm144_vm1, %v143_v63, 0  ;;  %v1386_v8 = vadd.s32 4294967169, %v446_v5  ;;  %v1903_v12 = vsel %vm247_vm2, %v246_v1, 0  ;;  %v351_v13 = vsel %vm350_vm3, %v349_v4, 0 }
  0xc7   :  { %v1900_v9 = vand.u32 31, %v1897_v6  ;;  %v353_v17 = vand.u32 31, %v351_v13  ;;  %v1920_v23 = vand.u32 31, %v1903_v12  ;;  %v352_v25 = vshrl.u32 %v351_v13, 5 }
  0xc8   :  { %v452_v14 = vadd.s32 1, %v1386_v8  ;;  %v1390_v29 = vadd.s32 4294967169, %v549_v10 }
  0xc9   :  { %v1907_v16 = vsub.s32 32, %v1900_v9  ;;  %v1913_v20 = vshll.u32 %v1754_v19, %v1900_v9  ;;  %v354_v26 = vsub.s32 32, %v353_v17  ;;  %v356_v33 = vshll.u32 %v2507_v32, %v353_v17 }
  0xca   :  { %vm453_vm4 = vcmp.gt.s32.totalorder %v452_v14, 0  ;;  %v359_v35 = vshll.u32 %v2505_v34, %v353_v17  ;;  %v362_v40 = vshll.u32 %v2503_v38, %v353_v17  ;;  %v365_v46 = vshll.u32 %v2501_v41, %v353_v17 }
  0xcb   :  { %v1917_v22 = vshrl.u32 %v1755_v21, %v1907_v16  ;;  %v1931_v36 = vsel %vm453_vm4, %v452_v14, 0  ;;  %v357_v37 = vshrl.u32 %v2505_v34, %v354_v26  ;;  %v360_v39 = vshrl.u32 %v2503_v38, %v354_v26 }
  0xcc   :  { %v363_v45 = vshrl.u32 %v2501_v41, %v354_v26  ;;  %v366_v47 = vshrl.u32 %v1754_v19, %v354_v26  ;;  %v368_v49 = vshll.u32 %v1754_v19, %v353_v17  ;;  %v369_v50 = vshrl.u32 %v1755_v21, %v354_v26 }
  0xcd   :  { %v358_v51 = vor.u32 %v357_v37, %v356_v33  ;;  %v361_v52 = vor.u32 %v360_v39, %v359_v35  ;;  %v555_v54 = vadd.s32 1, %v1390_v29  ;;  %v355_v55 = vshrl.u32 %v2507_v32, %v354_v26 }
  0xce   :  { %v364_v53 = vor.u32 %v363_v45, %v362_v40  ;;  %v367_v58 = vor.u32 %v366_v47, %v365_v46  ;;  %v370_v59 = vor.u32 %v369_v50, %v368_v49  ;;  %vm371_vm5 = vcmp.lt.s32.totalorder %v352_v25, 1 }
  0xcf   :  { %vm373_vm6 = vcmp.lt.s32.totalorder %v352_v25, 3  ;;  %vm374_vm7 = vcmp.lt.s32.totalorder %v352_v25, 4  ;;  %v379_v60 = vsel %vm371_vm5, %v358_v51, %v361_v52  ;;  %vm372_vm8 = vcmp.lt.s32.totalorder %v352_v25, 2 }
  0xd0   :  { %v383_v61 = vsel %vm371_vm5, %v361_v52, %v364_v53  ;;  %v376_v62 = vsel %vm374_vm7, %v364_v53, 2102212464  ;;  %v380_v63 = vsel %vm374_vm7, %v367_v58, 920167782  ;;  %v384_v1 = vsel %vm374_vm7, %v370_v59, 1326507024 }
  0xd1   :  { %v375_v3 = vsel %vm371_vm5, %v355_v55, %v358_v51  ;;  %v381_v4 = vsel %vm373_vm6, %v364_v53, %v380_v63  ;;  %v385_v5 = vsel %vm373_vm6, %v367_v58, %v384_v1  ;;  %v377_v7 = vsel %vm373_vm6, %v361_v52, %v376_v62 }
  0xd2   :  { %v382_v8 = vsel %vm372_vm8, %v379_v60, %v381_v4  ;;  %v386_v10 = vsel %vm372_vm8, %v383_v61, %v385_v5  ;;  %v1943_v13 = vand.u32 31, %v1931_v36  ;;  %v378_v25 = vsel %vm372_vm8, %v375_v3, %v377_v7 }
  0xd3   :  { %v1946_v14 = vmul.u32.u64.low %v1909_v18, %v386_v10  ;;  %v1947_v15 = vmul.u32.u64.high %v1909_v18, %v386_v10, %v1946_v14  ;;  %v1950_v17 = vmul.u32.u64.low %v1909_v18, %v382_v8  ;;  %v1951_v26 = vmul.u32.u64.high %v1909_v18, %v382_v8, %v1950_v17 }
  0xd4   :  { %v1954_v29 = vsub.s32 32, %v1943_v13  ;;  %vm556_vm9 = vcmp.gt.s32.totalorder %v555_v54, 0  ;;  %v1394_v33 = vadd.s32 4294967169, %v652_v30  ;;  %v2498_v35 = vand.u32 2147483647, %v1879_v43 }
  0xd5   :  { %v1958_v37 = vsub.s32 32, %v1920_v23  ;;  %v1962_v39 = vshll.u32 %v1754_v19, %v1943_v13  ;;  %vm396_vm10 = vc.u32 %v1947_v15, %v1950_v17  ;;  %v397_v45 = vadd.s32 1, %v1951_v26 }
  0xd6   :  { %v1966_v40 = vshrl.u32 %v1755_v21, %v1954_v29  ;;  %v656_v46 = vor.u32 8388608, %v1924_v24  ;;  %v394_v30 = vmul.u32 %v1909_v18, %v378_v25  ;;  %v1974_v49 = vsel %vm556_vm9, %v555_v54, 0 }
  0xd7   :  { %v658_v50 = vadd.s32 1, %v1394_v33  ;;  %v398_v51 = vsel %vm396_vm10, %v397_v45, %v1951_v26  ;;  %v1979_v52 = vand.u32 8388607, %v2498_v35  ;;  %v1982_v53 = vshrl.u32 %v1903_v12, 5 }
  0xd8   :  { %v399_v55 = vadd.s32 %v398_v51, %v394_v30  ;;  %v1986_v24 = vshrl.u32 %v2507_v32, %v1958_v37  ;;  %v1989_v18 = vadd.s32 %v1950_v17, %v1947_v15  ;;  %v1992_v54 = vand.u32 31, %v1974_v49 }
  0xd9   :  { %vm659_vm11 = vcmp.gt.s32.totalorder %v658_v50, 0  ;;  %v1994_v58 = vshll.u32 %v656_v46, 8  ;;  %v244_v61 = vor.u32 8388608, %v1979_v52  ;;  %v253_v12 = vshll.u32 %v2507_v32, %v1920_v23 }
  0xda   :  { %v400_v59 = vadd.s32 536870912, %v399_v55  ;;  %v660_v60 = vsel %vm659_vm11, %v658_v50, 0  ;;  %v254_v1 = vshrl.u32 %v2505_v34, %v1958_v37  ;;  %v256_v3 = vshll.u32 %v2505_v34, %v1920_v23 }
  0xdb   :  { %v661_v62 = vshrl.u32 %v660_v60, 5  ;;  %v662_v63 = vand.u32 31, %v660_v60  ;;  %v257_v5 = vshrl.u32 %v2503_v38, %v1958_v37  ;;  %v259_v7 = vshll.u32 %v2503_v38, %v1920_v23 }
  0xdc   :  { %v2003_v4 = vshrl.u32 %v400_v59, 30  ;;  %v260_v8 = vshrl.u32 %v2501_v41, %v1958_v37  ;;  %v262_v17 = vshll.u32 %v2501_v41, %v1920_v23  ;;  %vm268_vm1 = vcmp.lt.s32.totalorder %v1982_v53, 1 }
  0xdd   :  { %v663_v10 = vsub.s32 32, %v662_v63  ;;  %v665_v14 = vshll.u32 %v2507_v32, %v662_v63  ;;  %v668_v15 = vshll.u32 %v2505_v34, %v662_v63  ;;  %v671_v25 = vshll.u32 %v2503_v38, %v662_v63 }
  0xde   :  { %v402_v26 = vshll.u32 %v2003_v4, 30  ;;  %v674_v33 = vshll.u32 %v2501_v41, %v662_v63  ;;  %v677_v45 = vshll.u32 %v1754_v19, %v662_v63  ;;  %vm680_vm12 = vcmp.lt.s32.totalorder %v661_v62, 1 }
  0xdf   :  { %v666_v46 = vshrl.u32 %v2505_v34, %v663_v10  ;;  %v669_v30 = vshrl.u32 %v2503_v38, %v663_v10  ;;  %v672_v50 = vshrl.u32 %v2501_v41, %v663_v10  ;;  %v664_v59 = vshrl.u32 %v2507_v32, %v663_v10 }
  0xe0   :  { %v2022_v51 = vsub.s32 %v399_v55, %v402_v26  ;;  %v675_v60 = vshrl.u32 %v1754_v19, %v663_v10  ;;  %v678_v0 = vshrl.u32 %v1755_v21, %v663_v10  ;;  %vm682_vm13 = vcmp.lt.s32.totalorder %v661_v62, 3 }
  0xe1   :  { %v667_v35 = vor.u32 %v666_v46, %v665_v14  ;;  %v670_v47 = vor.u32 %v669_v30, %v668_v15  ;;  %v673_v31 = vor.u32 %v672_v50, %v671_v25  ;;  %vm683_vm14 = vcmp.lt.s32.totalorder %v661_v62, 4 }
  0xe2   :  { %v405_v63 = vsub.s32 0, %v2022_v51  ;;  %v676_v48 = vor.u32 %v675_v60, %v674_v33  ;;  %v679_v11 = vor.u32 %v678_v0, %v677_v45  ;;  %vm681_vm15 = vcmp.lt.s32.totalorder %v661_v62, 2 }
  0xe3   :  { %v684_v41 = vsel %vm680_vm12, %v664_v59, %v667_v35  ;;  %v685_v38 = vsel %vm683_vm14, %v673_v31, 2102212464  ;;  %v688_v55 = vsel %vm680_vm12, %v667_v35, %v670_v47  ;;  %v692_v26 = vsel %vm680_vm12, %v670_v47, %v673_v31 }
  0xe4   :  { %v1383_v34 = vmin.u32 %v405_v63, %v2022_v51  ;;  %v686_v32 = vsel %vm682_vm13, %v670_v47, %v685_v38  ;;  %v689_v10 = vsel %vm683_vm14, %v676_v48, 920167782  ;;  %v693_v14 = vsel %vm683_vm14, %v679_v11, 1326507024 }
  0xe5   :  { %v690_v15 = vsel %vm682_vm13, %v673_v31, %v689_v10  ;;  %v694_v25 = vsel %vm682_vm13, %v676_v48, %v693_v14  ;;  %v263_v33 = vshrl.u32 %v1754_v19, %v1958_v37  ;;  %v687_v45 = vsel %vm681_vm15, %v684_v41, %v686_v32 }
  0xe6   :  { %v407_v0 = vclz %v1383_v34  ;;  %v691_v46 = vsel %vm681_vm15, %v688_v55, %v690_v15  ;;  %v695_v30 = vsel %vm681_vm15, %v692_v26, %v694_v25  ;;  %v255_v38 = vor.u32 %v254_v1, %v253_v12 }
  0xe7   :  { %v2035_v50 = vmul.u32.u64.low %v1994_v58, %v695_v30  ;;  %v2036_v35 = vmul.u32.u64.high %v1994_v58, %v695_v30, %v2035_v50  ;;  %v2039_v59 = vmul.u32.u64.low %v1994_v58, %v691_v46  ;;  %v2040_v60 = vmul.u32.u64.high %v1994_v58, %v691_v46, %v2039_v59 }
  0xe8   :  { %v1384_v11 = vadd.s32 4294967294, %v407_v0  ;;  %v258_v31 = vor.u32 %v257_v5, %v256_v3  ;;  %v266_v48 = vshrl.u32 %v1755_v21, %v1958_v37  ;;  %v703_v34 = vmul.u32 %v1994_v58, %v687_v45 }
  0xe9   :  { %v261_v32 = vor.u32 %v260_v8, %v259_v7  ;;  %v264_v41 = vor.u32 %v263_v33, %v262_v17  ;;  %v265_v47 = vshll.u32 %v1754_v19, %v1920_v23  ;;  %vm269_vm2 = vcmp.lt.s32.totalorder %v1982_v53, 2 }
  0xea   :  { %vm1385_vm0 = vcmp.lt.s32.totalorder %v1384_v11, 0  ;;  %vm270_vm3 = vcmp.lt.s32.totalorder %v1982_v53, 3  ;;  %vm705_vm4 = vc.u32 %v2036_v35, %v2039_v59  ;;  %v706_v37 = vadd.s32 1, %v2040_v60 }
  0xeb   :  { %v410_v62 = vsel %vm1385_vm0, 0, %v1384_v11  ;;  %v267_v12 = vor.u32 %v266_v48, %v265_v47  ;;  %vm271_vm5 = vcmp.lt.s32.totalorder %v1982_v53, 4  ;;  %v272_v23 = vsel %vm268_vm1, %v1986_v24, %v255_v38 }
  0xec   :  { %v411_v58 = vsub.s32 32, %v410_v62  ;;  %v415_v1 = vsub.s32 4294967266, %v410_v62  ;;  %v707_v3 = vsel %vm705_vm4, %v706_v37, %v2040_v60  ;;  %v273_v5 = vsel %vm271_vm5, %v261_v32, 2102212464 }
  0xed   :  { %v276_v7 = vsel %vm268_vm1, %v255_v38, %v258_v31  ;;  %v277_v8 = vsel %vm271_vm5, %v264_v41, 920167782  ;;  %v708_v55 = vadd.s32 %v707_v3, %v703_v34  ;;  %v280_v24 = vsel %vm268_vm1, %v258_v31, %v261_v32 }
  0xee   :  { %v413_v17 = vshrl.u32 %v1989_v18, %v411_v58  ;;  %v416_v63 = vadd.s32 127, %v415_v1  ;;  %v278_v26 = vsel %vm270_vm3, %v261_v32, %v277_v8  ;;  %v281_v14 = vsel %vm271_vm5, %v267_v12, 1326507024 }
  0xef   :  { %v279_v10 = vsel %vm269_vm2, %v276_v7, %v278_v26  ;;  %v284_v15 = vshll.u32 %v244_v61, 8  ;;  %v709_v33 = vadd.s32 536870912, %v708_v55  ;;  %v274_v18 = vsel %vm270_vm3, %v258_v31, %v273_v5 }
  0xf0   :  { %v417_v25 = vshll.u32 %v416_v63, 23  ;;  %v282_v0 = vsel %vm270_vm3, %v264_v41, %v281_v14  ;;  %v412_v45 = vshll.u32 %v2022_v51, %v410_v62  ;;  %v560_v52 = vsub.s32 32, %v1992_v54 }
  0xf1   :  { %v283_v46 = vsel %vm269_vm2, %v280_v24, %v282_v0  ;;  %v2077_v30 = vmul.u32.u64.low %v284_v15, %v279_v10  ;;  %v2078_v50 = vmul.u32.u64.high %v284_v15, %v279_v10, %v2077_v30  ;;  %v2082_v61 = vshrl.u32 %v709_v33, 30 }
  0xf2   :  { %v418_v60 = vor.u32 4788187, %v417_v25  ;;  %v414_v11 = vor.u32 %v413_v17, %v412_v45  ;;  %v275_v38 = vsel %vm269_vm2, %v272_v23, %v274_v18  ;;  %v545_v34 = vand.u32 2147483647, %v1889_v57 }
  0xf3   :  { %v2086_v31 = vmul.u32.u64.low %v284_v15, %v283_v46  ;;  %v2087_v48 = vmul.u32.u64.high %v284_v15, %v283_v46, %v2086_v31  ;;  %v711_v51 = vshll.u32 %v2082_v61, 30  ;;  %v294_v41 = vadd.s32 1, %v2078_v50 }
  0xf4   :  { %v419_v32 = vand.u32 2147483647, %v418_v60  ;;  %v2093_v47 = vshrl.u32 %v1897_v6, 5  ;;  %v2096_v62 = vshrl.u32 %v1974_v49, 5  ;;  %v291_v53 = vmul.u32 %v284_v15, %v275_v38 }
  0xf5   :  { %v2098_v37 = vsub.s32 %v708_v55, %v711_v51  ;;  %v421_v12 = vcvt.s32.f32 %v414_v11  ;;  %vm293_vm6 = vc.u32 %v2087_v48, %v2077_v30  ;;  %v2509_v58 = vmov 683565275  }
  0xf6   :  { %v562_v1 = vshll.u32 %v2509_v58, %v1992_v54  ;;  %v2510_v23 = vmov 2475754826   ;;  %v295_v6 = vsel %vm293_vm6, %v294_v41, %v2078_v50  ;;  %v552_v49 = vand.u32 8388607, %v545_v34 }
  0xf7   :  { %v563_v3 = vshrl.u32 %v2510_v23, %v560_v52  ;;  %v714_v5 = vsub.s32 0, %v2098_v37  ;;  %v2511_v7 = vmov 2131351028   ;;  %v422_v17 = vmul.f32 %v421_v12, %v419_v32 }
  0xf8   :  { %v566_v8 = vshrl.u32 %v2511_v7, %v560_v52  ;;  %v296_v63 = vadd.s32 %v295_v6, %v291_v53  ;;  %v565_v55 = vshll.u32 %v2510_v23, %v1992_v54  ;;  %v2512_v26 = vmov 2102212464  }
  0xf9   :  { %v569_v10 = vshrl.u32 %v2512_v26, %v560_v52  ;;  %v1395_v24 = vmin.u32 %v714_v5, %v2098_v37  ;;  %v568_v14 = vshll.u32 %v2511_v7, %v1992_v54  ;;  %v571_v15 = vshll.u32 %v2512_v26, %v1992_v54 }
  0xfa   :  { %v572_v25 = vshrl.u32 %v1754_v19, %v560_v52  ;;  %v297_v33 = vadd.s32 536870912, %v296_v63  ;;  %v564_v18 = vor.u32 %v563_v3, %v562_v1  ;;  %v574_v0 = vshll.u32 %v1754_v19, %v1992_v54 }
  0xfb   :  { %v575_v45 = vshrl.u32 %v1755_v21, %v560_v52  ;;  %vm341_vm7 = vcmp.lt.s32.totalorder %v1881_v44, 0  ;;  %v716_v46 = vclz %v1395_v24  ;;  %v567_v50 = vor.u32 %v566_v8, %v565_v55 }
  0xfc   :  { %v570_v60 = vor.u32 %v569_v10, %v568_v14  ;;  %v573_v11 = vor.u32 %v572_v25, %v571_v15  ;;  %v160_v38 = vshrl.u32 %v1754_v19, %v1907_v16  ;;  %v2125_v31 = vshrl.u32 %v297_v33, 30 }
  0xfd   :  { %v576_v51 = vor.u32 %v575_v45, %v574_v0  ;;  %vm580_vm8 = vcmp.lt.s32.totalorder %v2096_v62, 4  ;;  %v704_v32 = vadd.s32 %v2039_v59, %v2036_v35  ;;  %v1396_v54 = vadd.s32 4294967294, %v716_v46 }
  0xfe   :  { %v561_v21 = vshrl.u32 %v2509_v58, %v560_v52  ;;  %v586_v41 = vsel %vm580_vm8, %v573_v11, 920167782  ;;  %v299_v53 = vshll.u32 %v2125_v31, 30  ;;  %v553_v12 = vor.u32 8388608, %v552_v49 }
  0xff   :  { %vm577_vm9 = vcmp.lt.s32.totalorder %v2096_v62, 1  ;;  %vm579_vm10 = vcmp.lt.s32.totalorder %v2096_v62, 3  ;;  %v423_v1 = vxor.u32 2147483648, %v422_v17  ;;  %vm1397_vm11 = vcmp.lt.s32.totalorder %v1396_v54, 0 }
 0x100   :  { %v585_v3 = vsel %vm577_vm9, %v564_v18, %v567_v50  ;;  %v587_v35 = vsel %vm579_vm10, %v570_v60, %v586_v41  ;;  %v719_v59 = vsel %vm1397_vm11, 0, %v1396_v54  ;;  %v2140_v52 = vsub.s32 %v296_v63, %v299_v53 }
 0x101   :  { %v589_v5 = vsel %vm577_vm9, %v567_v50, %v570_v60  ;;  %v590_v6 = vsel %vm580_vm8, %v576_v51, 1326507024  ;;  %v720_v49 = vsub.s32 32, %v719_v59  ;;  %v724_v8 = vsub.s32 4294967266, %v719_v59 }
 0x102   :  { %vm578_vm12 = vcmp.lt.s32.totalorder %v2096_v62, 2  ;;  %v582_v55 = vsel %vm580_vm8, %v570_v60, 2102212464  ;;  %v721_v10 = vshll.u32 %v2098_v37, %v719_v59  ;;  %v302_v24 = vsub.s32 0, %v2140_v52 }
 0x103   :  { %v588_v63 = vsel %vm578_vm12, %v585_v3, %v587_v35  ;;  %v591_v14 = vsel %vm579_vm10, %v573_v11, %v590_v6  ;;  %v722_v15 = vshrl.u32 %v704_v32, %v720_v49  ;;  %v725_v25 = vadd.s32 127, %v724_v8 }
 0x104   :  { %v592_v33 = vsel %vm578_vm12, %v589_v5, %v591_v14  ;;  %v593_v0 = vshll.u32 %v553_v12, 8  ;;  %v424_v45 = vsel %vm341_vm7, %v423_v1, %v422_v17  ;;  %v1379_v46 = vmin.u32 %v302_v24, %v2140_v52 }
 0x105   :  { %v581_v37 = vsel %vm577_vm9, %v561_v21, %v564_v18  ;;  %v583_v60 = vsel %vm579_vm10, %v567_v50, %v582_v55  ;;  %v723_v51 = vor.u32 %v722_v15, %v721_v10  ;;  %v726_v54 = vshll.u32 %v725_v25, 23 }
 0x106   :  { %v2164_v11 = vmul.u32.u64.low %v593_v0, %v592_v33  ;;  %v2165_v32 = vmul.u32.u64.high %v593_v0, %v592_v33, %v2164_v11  ;;  %v159_v41 = vshll.u32 %v2512_v26, %v1900_v9  ;;  %vm650_vm13 = vcmp.lt.s32.totalorder %v1894_v2, 0 }
 0x107   :  { %v304_v53 = vclz %v1379_v46  ;;  %v2170_v17 = vmul.u32.u64.low %v593_v0, %v588_v63  ;;  %v2171_v12 = vmul.u32.u64.high %v593_v0, %v588_v63, %v2170_v17  ;;  %v2513_v18 = vand.u32 2147483647, %v1894_v2 }
 0x108   :  { %v727_v50 = vor.u32 4788187, %v726_v54  ;;  %v584_v1 = vsel %vm578_vm12, %v581_v37, %v583_v60  ;;  %v2516_v3 = vand.u32 2147483647, %v1881_v44  ;;  %v2188_v59 = vor.u32 %v160_v38, %v159_v41 }
 0x109   :  { %vm2176_vm14 = vcmp.le.f32.partialorder %v2513_v18, 0.7853982  ;;  %vm168_vm0 = vcmp.lt.s32.totalorder %v2093_v47, 4  ;;  %v469_v5 = vshrl.u32 %v1754_v19, %v1954_v29  ;;  %v1380_v6 = vadd.s32 4294967294, %v304_v53 }
 0x10a   :  { %vm2184_vm15 = vcmp.le.f32.partialorder %v2516_v3, 0.7853982  ;;  %v728_v62 = vand.u32 2147483647, %v727_v50  ;;  %v730_v8 = vcvt.s32.f32 %v723_v51  ;;  %vm602_vm1 = vc.u32 %v2165_v32, %v2170_v17 }
 0x10b   :  { %v427_v49 = vsel %vm2184_vm15, %v1881_v44, %v424_v45  ;;  %v425_v55 = vsub.s32 4, %v2003_v4  ;;  %vm1381_vm2 = vcmp.lt.s32.totalorder %v1380_v6, 0  ;;  %v600_v38 = vmul.u32 %v593_v0, %v584_v1 }
 0x10c   :  { %v603_v10 = vadd.s32 1, %v2171_v12  ;;  %1622 = vcosq.f32 %v427_v49  ;;  %v731_v24 = vmul.f32 %v730_v8, %v728_v62  ;;  %v307_v63 = vsel %vm1381_vm2, 0, %v1380_v6 }
 0x10d   :  { %1624 = vsinq.f32 %v427_v49  ;;  %v734_v19 = vsub.s32 4, %v2082_v61  ;;  %v292_v14 = vadd.s32 %v2077_v30, %v2087_v48  ;;  %v308_v15 = vsub.s32 32, %v307_v63 }
 0x10e   :  { %v312_v25 = vsub.s32 4294967266, %v307_v63  ;;  %v604_v33 = vsel %vm602_vm1, %v603_v10, %v2171_v12  ;;  %v468_v45 = vshll.u32 %v2512_v26, %v1943_v13  ;;  %v732_v46 = vxor.u32 2147483648, %v731_v24 }
 0x10f   :  { %v605_v0 = vadd.s32 %v604_v33, %v600_v38  ;;  %v426_v37 = vsel %vm341_vm7, %v425_v55, %v2003_v4  ;;  %v2210_v60 = vshrl.u32 %v1931_v36, 5  ;;  %v309_v51 = vshll.u32 %v2140_v52, %v307_v63 }
 0x110   :  { %v310_v54 = vshrl.u32 %v292_v14, %v308_v15  ;;  %v313_v30 = vadd.s32 127, %v312_v25  ;;  %v2213_v48 = vor.u32 %v469_v5, %v468_v45  ;;  %v733_v11 = vsel %vm650_vm13, %v732_v46, %v731_v24 }
 0x111   :  { %v606_v41 = vadd.s32 536870912, %v605_v0  ;;  %v735_v53 = vsel %vm650_vm13, %v734_v19, %v2082_v61  ;;  %v736_v4 = vsel %vm2176_vm14, %v1894_v2, %v733_v11  ;;  %v428_v52 = vsel %vm2184_vm15, 0, %v426_v37 }
 0x112   :  { %v311_v36 = vor.u32 %v310_v54, %v309_v51  ;;  %v314_v12 = vshll.u32 %v313_v30, 23  ;;  %v2228_v18 = vsel %vm168_vm0, %v2188_v59, 920167782  ;;  %1626 = vcosq.f32 %v736_v4 }
 0x113   :  { %v2230_v50 = vshrl.u32 %v606_v41, 30  ;;  %vm477_vm3 = vcmp.lt.s32.totalorder %v2210_v60, 4  ;;  %1628 = vsinq.f32 %v736_v4  ;;  %v737_v1 = vsel %vm2176_vm14, 0, %v735_v53 }
 0x114   :  { %v315_v61 = vor.u32 4788187, %v314_v12  ;;  %v2519_v3 = vor.u32 %v1917_v22, %v1913_v20  ;;  %v2245_v5 = vsel %vm477_vm3, %v2213_v48, 920167782  ;;  %v432_v49 = vand.u32 3, %v428_v52 }
 0x115   :  { %v608_v6 = vshll.u32 %v2230_v50, 30  ;;  %v2520_v21 = vor.u32 %v1966_v40, %v1962_v39  ;;  %v318_v22 = vcvt.s32.f32 %v311_v36  ;;  %v322_v55 = vsub.s32 4, %v2125_v31 }
 0x116   :  { %v2240_v35 = vsel %vm168_vm0, %v2519_v3, 1326507024  ;;  %v1623_v62 = vpop.eup %1622  ;;  %v316_v20 = vand.u32 2147483647, %v315_v61  ;;  %vm238_vm4 = vcmp.lt.s32.totalorder %v1879_v43, 0  ;;  %v741_v63 = vand.u32 3, %v737_v1 }
 0x117   :  { %v2253_v8 = vsel %vm477_vm3, %v2520_v21, 1326507024  ;;  %v1625_v38 = vpop.eup %1624  ;;  %v2257_v10 = vsub.s32 %v605_v0, %v608_v6  ;;  %v438_v24 = vxor.u32 2147483648, %v1623_v62  ;;  %v133_v19 = vand.u32 2147483647, %v1877_v42 }
 0x118   :  { %v319_v14 = vmul.f32 %v318_v22, %v316_v20  ;;  %v601_v39 = vadd.s32 %v2170_v17, %v2165_v32  ;;  %vm431_vm5 = vweird.f32 %v1881_v44  ;;  %v435_v40 = vxor.u32 2147483648, %v1625_v38 }
 0x119   :  { %v611_v15 = vsub.s32 0, %v2257_v10  ;;  %vm433_vm6 = vcmp.lt.s32.totalorder %v432_v49, 2  ;;  %vm434_vm7 = vcmp.eq.s32.totalorder %v432_v49, 0  ;;  %vm437_vm8 = vcmp.eq.s32.totalorder %v432_v49, 2 }
 0x11a   :  { %v436_v25 = vsel %vm434_vm7, %v1623_v62, %v435_v40  ;;  %v439_v33 = vsel %vm437_vm8, %v438_v24, %v1625_v38  ;;  %vm740_vm9 = vweird.f32 %v1894_v2  ;;  %v151_v45 = vshrl.u32 %v2510_v23, %v1907_v16 }
 0x11b   :  { %v1391_v46 = vmin.u32 %v611_v15, %v2257_v10  ;;  %vm742_vm10 = vcmp.lt.s32.totalorder %v741_v63, 2  ;;  %vm948_vm11 = vcmask 523264   ;;  %v140_v32 = vand.u32 8388607, %v133_v19  ;;  %v1580_v15 = vld [vmem:[#allocation2] sm:$0xff]  }
 0x11c   :  { %v150_v17 = vshll.u32 %v2509_v58, %v1900_v9  ;;  %v320_v0 = vxor.u32 2147483648, %v319_v14  ;;  %vm743_vm12 = vcmp.eq.s32.totalorder %v741_v63, 0  ;;  %v153_v37 = vshll.u32 %v2510_v23, %v1900_v9  ;;  %v1627_v54 = vpop.eup %1626 }
 0x11d   :  { %v154_v51 = vshrl.u32 %v2511_v7, %v1907_v16  ;;  %v2521_v30 = vand.u32 2147483647, %v1879_v43  ;;  %v613_v41 = vclz %v1391_v46  ;;  %v440_v53 = vsel %vm433_vm6, %v436_v25, %v439_v33  ;;  %v1629_v36 = vpop.eup %1628 }
 0x11e   :  { %vm746_vm14 = vcmp.eq.s32.totalorder %v741_v63, 2  ;;  %v152_v4 = vor.u32 %v151_v45, %v150_v17  ;;  %v747_v12 = vxor.u32 2147483648, %v1627_v54  ;;  %v156_v61 = vshll.u32 %v2511_v7, %v1900_v9  ;;  %v1597_v63 = vld [vmem:[%s2488_s1 + $0x4] ss:$8 sps:$4 sm:$0xff]  }
 0x11f   :  { %vm2278_vm13 = vcmp.le.f32.partialorder %v2521_v30, 0.7853982  ;;  %v155_v52 = vor.u32 %v154_v51, %v153_v37  ;;  %v157_v1 = vshrl.u32 %v2512_v26, %v1907_v16  ;;  %v1392_v3 = vadd.s32 4294967294, %v613_v41  ;;  %v1581_v17 = vld [vmem:[#allocation2 + $0x48] sm:$0xff]  }
 0x120   :  { %v744_v6 = vxor.u32 2147483648, %v1629_v36  ;;  %v141_v62 = vor.u32 8388608, %v140_v32  ;;  %v149_v21 = vshrl.u32 %v2509_v58, %v1907_v16  ;;  %v321_v49 = vsel %vm238_vm4, %v320_v0, %v319_v14 }
 0x121   :  { %v441_v20 = vsel %vm431_vm5, nan, %v440_v53  ;;  %v748_v22 = vsel %vm746_vm14, %v747_v12, %v1629_v36  ;;  %v158_v38 = vor.u32 %v157_v1, %v156_v61  ;;  %vm1393_vm15 = vcmp.lt.s32.totalorder %v1392_v3, 0 }
 0x122   :  { %v745_v9 = vsel %vm743_vm12, %v1627_v54, %v744_v6  ;;  %vm165_vm1 = vcmp.lt.s32.totalorder %v2093_v47, 1  ;;  %vm167_vm2 = vcmp.lt.s32.totalorder %v2093_v47, 3  ;;  %v616_v24 = vsel %vm1393_vm15, 0, %v1392_v3 }
 0x123   :  { %v749_v40 = vsel %vm742_vm10, %v745_v9, %v748_v22  ;;  %v173_v16 = vsel %vm165_vm1, %v152_v4, %v155_v52  ;;  %v175_v44 = vsel %vm167_vm2, %v158_v38, %v2228_v18  ;;  %v617_v14 = vsub.s32 32, %v616_v24 }
 0x124   :  { %v621_v25 = vsub.s32 4294967266, %v616_v24  ;;  %v750_v33 = vsel %vm740_vm9, nan, %v749_v40  ;;  %vm166_vm5 = vcmp.lt.s32.totalorder %v2093_v47, 2  ;;  %v618_v45 = vshll.u32 %v2257_v10, %v616_v24  ;;  %v1585_v24 = vld [vmem:[#allocation2 + $0x58] sm:$0xff]  }
 0x125   :  { %v753_v46 = vpack.c.bf16 %v750_v33, %v441_v20  ;;  %v170_v32 = vsel %vm168_vm0, %v158_v38, 2102212464  ;;  %v177_v18 = vsel %vm165_vm1, %v155_v52, %v158_v38  ;;  %v619_v0 = vshrl.u32 %v601_v39, %v617_v14 }
 0x126   :  { %v622_v37 = vadd.s32 127, %v621_v25  ;;  %v176_v2 = vsel %vm166_vm5, %v173_v16, %v175_v44  ;;  %v179_v51 = vsel %vm167_vm2, %v2188_v59, %v2240_v35  ;;  %v324_v10 = vsel %vm2278_vm13, %v1879_v43, %v321_v49  ;;  %v1582_v35 = vld [vmem:[#allocation2 + $0x8] sm:$0xff]  }
 0x127   :  { %1512 = vmatmul.mubr.msk.bf16.vlgmr.msra.gmra.mrb[0].mxu1 %vm948_vm11, %v753_v46  ;;  %v169_v54 = vsel %vm165_vm1, %v149_v21, %v152_v4  ;;  %v180_v39 = vsel %vm166_vm5, %v177_v18, %v179_v51  ;;  %v181_v30 = vshll.u32 %v141_v62, 8  ;;  %v620_v41 = vor.u32 %v619_v0, %v618_v45  ;;  %v1583_v4 = vld [vmem:[#allocation2 + $0x50] sm:$0xff]  }
 0x128   :  { %v623_v53 = vshll.u32 %v622_v37, 23  ;;  %1482 = vmatpush3.bf16.msra.mxu1 %v1580_v15  ;;  %v171_v36 = vsel %vm167_vm2, %v155_v52, %v170_v32  ;;  %v442_v59 = vand.u32 2147483647, %v1887_v56  ;;  %1172 = vmatprep.mubr.bf16.mxu1 %v1597_v63  ;;  %1630 = vcosq.f32 %v324_v10 }
 0x129   :  { %v2330_v12 = vmul.u32.u64.low %v181_v30, %v180_v39  ;;  %v2331_v61 = vmul.u32.u64.high %v181_v30, %v180_v39, %v2330_v12  ;;  %v2333_v1 = vmul.u32.u64.low %v181_v30, %v176_v2  ;;  %v2334_v3 = vmul.u32.u64.high %v181_v30, %v176_v2, %v2333_v1  ;;  %1483 = vmatprep.subr.bf16.mxu1 %v1581_v17 }
 0x12a   :  { %vm547_vm0 = vcmp.lt.s32.totalorder %v1889_v57, 0  ;;  %v624_v6 = vor.u32 4788187, %v623_v53  ;;  %v631_v62 = vsub.s32 4, %v2230_v50  ;;  %v2343_v52 = vsel %vm238_vm4, %v322_v55, %v2125_v31  ;;  %v1584_v31 = vld [vmem:[#allocation2 + $0x10] sm:$0xff]   ;;  %v1589_v53 = vld [vmem:[#allocation2 + $0x68] sm:$0xff]  }
 0x12b   :  { %1632 = vsinq.f32 %v324_v10  ;;  %vm2347_vm6 = vcmp.le.f32.partialorder %v545_v34, 0.7853982  ;;  %v172_v49 = vsel %vm166_vm5, %v169_v54, %v171_v36  ;;  %v627_v22 = vcvt.s32.f32 %v620_v41 }
 0x12c   :  { %v625_v20 = vand.u32 2147483647, %v624_v6  ;;  %v449_v38 = vand.u32 8388607, %v442_v59  ;;  %v460_v9 = vshrl.u32 %v2510_v23, %v1954_v29  ;;  %1484 = vmatpush3.bf16.msra.mxu1 %v1582_v35  ;;  %v2358_v55 = vadd.s32 %v2333_v1, %v2331_v61 }
 0x12d   :  { %vm190_vm4 = vc.u32 %v2331_v61, %v2333_v1  ;;  %v191_v34 = vadd.s32 1, %v2334_v3  ;;  %v459_v47 = vshll.u32 %v2509_v58, %v1943_v13  ;;  %1485 = vmatprep.subr.bf16.mxu1 %v1583_v4  ;;  %v325_v40 = vsel %vm2278_vm13, 0, %v2343_v52 }
 0x12e   :  { %v628_v15 = vmul.f32 %v627_v22, %v625_v20  ;;  %v632_v16 = vsel %vm547_vm0, %v631_v62, %v2230_v50  ;;  %v188_v44 = vmul.u32 %v181_v30, %v172_v49  ;;  %v462_v33 = vshll.u32 %v2510_v23, %v1943_v13  ;;  %v1586_v50 = vld [vmem:[#allocation2 + $0x18] sm:$0xff]   ;;  %v1587_v23 = vld [vmem:[#allocation2 + $0x60] sm:$0xff]   ;;  %v1590_v62 = vld [vmem:[#allocation2 + $0x28] sm:$0xff]  }
 0x12f   :  { %v192_v14 = vsel %vm190_vm4, %v191_v34, %v2334_v3  ;;  %v461_v25 = vor.u32 %v460_v9, %v459_v47  ;;  %v463_v63 = vshrl.u32 %v2511_v7, %v1954_v29  ;;  %v465_v11 = vshll.u32 %v2511_v7, %v1943_v13  ;;  %v1591_v22 = vld [vmem:[#allocation2 + $0x70] sm:$0xff]  }
 0x130   :  { %v629_v45 = vxor.u32 2147483648, %v628_v15  ;;  %v193_v46 = vadd.s32 %v192_v14, %v188_v44  ;;  %v466_v32 = vshrl.u32 %v2512_v26, %v1954_v29  ;;  %1486 = vmatpush3.bf16.msra.mxu1 %v1584_v31  ;;  %v450_v18 = vor.u32 8388608, %v449_v38 }
 0x131   :  { %v464_v17 = vor.u32 %v463_v63, %v462_v33  ;;  %vm474_vm7 = vcmp.lt.s32.totalorder %v2210_v60, 1  ;;  %vm476_vm8 = vcmp.lt.s32.totalorder %v2210_v60, 3  ;;  %1487 = vmatprep.subr.bf16.mxu1 %v1585_v24  ;;  %v458_v26 = vshrl.u32 %v2509_v58, %v1954_v29 }
 0x132   :  { %v630_v0 = vsel %vm547_vm0, %v629_v45, %v628_v15  ;;  %v194_v37 = vadd.s32 536870912, %v193_v46  ;;  %v467_v2 = vor.u32 %v466_v32, %v465_v11  ;;  %v488_v13 = vsel %vm476_vm8, %v2213_v48, %v2253_v8  ;;  %v1631_v10 = vpop.eup %1630  ;;  %v1588_v8 = vld [vmem:[#allocation2 + $0x20] sm:$0xff]  }
 0x133   :  { %v633_v7 = vsel %vm2347_vm6, %v1889_v57, %v630_v0  ;;  %vm475_vm9 = vcmp.lt.s32.totalorder %v2210_v60, 2  ;;  %v482_v51 = vsel %vm474_vm7, %v461_v25, %v464_v17  ;;  %v490_v41 = vshll.u32 %v450_v18, 8  ;;  %v1592_v60 = vld [vmem:[#allocation2 + $0x30] sm:$0xff]   ;;  %v1594_v18 = vld [vmem:[#allocation2 + $0x38] sm:$0xff]  }
 0x134   :  { %1634 = vcosq.f32 %v633_v7  ;;  %v2395_v54 = vshrl.u32 %v194_v37, 30  ;;  %v479_v39 = vsel %vm477_vm3, %v467_v2, 2102212464  ;;  %v484_v48 = vsel %vm476_vm8, %v467_v2, %v2245_v5  ;;  %1488 = vmatpush3.bf16.msra.mxu1 %v1586_v50 }
 0x135   :  { %v1633_v30 = vpop.eup %1632  ;;  %1636 = vsinq.f32 %v633_v7  ;;  %v485_v29 = vsel %vm475_vm9, %v482_v51, %v484_v48  ;;  %v486_v58 = vsel %vm474_vm7, %v464_v17, %v467_v2  ;;  %1489 = vmatprep.subr.bf16.mxu1 %v1587_v23  ;;  %v478_v35 = vsel %vm474_vm7, %v458_v26, %v461_v25  ;;  %v1595_v7 = vld [vmem:[%s2488_s1] ss:$8 sps:$4 sm:$0xff]  }
 0x136   :  { %v196_v36 = vshll.u32 %v2395_v54, 30  ;;  %v480_v5 = vsel %vm476_vm8, %v464_v17, %v479_v39  ;;  %v489_v12 = vsel %vm475_vm9, %v486_v58, %v488_v13  ;;  %v329_v52 = vand.u32 3, %v325_v40 }
 0x137   :  { %v2413_v61 = vmul.u32.u64.low %v490_v41, %v489_v12  ;;  %v2414_v1 = vmul.u32.u64.high %v490_v41, %v489_v12, %v2413_v61  ;;  %v2416_v3 = vmul.u32.u64.low %v490_v41, %v485_v29  ;;  %v2417_v4 = vmul.u32.u64.high %v490_v41, %v485_v29, %v2416_v3 }
 0x138   :  { %v2419_v6 = vsub.s32 %v193_v46, %v196_v36  ;;  %1490 = vmatpush3.bf16.msra.mxu1 %v1588_v8  ;;  %v634_v49 = vsel %vm2347_vm6, 0, %v632_v16  ;;  %v481_v20 = vsel %vm475_vm9, %v478_v35, %v480_v5  ;;  %v332_v38 = vxor.u32 2147483648, %v1633_v30  ;;  %v1593_v16 = vld [vmem:[#allocation2 + $0x78] sm:$0xff]  }
 0x139   :  { %1491 = vmatprep.subr.bf16.mxu1 %v1589_v53  ;;  %v335_v9 = vxor.u32 2147483648, %v1631_v10  ;;  %v2427_v34 = vadd.s32 %v2416_v3, %v2414_v1  ;;  %vm499_vm3 = vc.u32 %v2414_v1, %v2416_v3  ;;  %v500_v47 = vadd.s32 1, %v2417_v4 }
 0x13a   :  { %v199_v31 = vsub.s32 0, %v2419_v6  ;;  %v638_v24 = vand.u32 3, %v634_v49  ;;  %v497_v40 = vmul.u32 %v490_v41, %v481_v20  ;;  %vm331_vm10 = vcmp.eq.s32.totalorder %v329_v52, 0 }
 0x13b   :  { %vm334_vm11 = vcmp.eq.s32.totalorder %v329_v52, 2  ;;  %v501_v15 = vsel %vm499_vm3, %v500_v47, %v2417_v4  ;;  %v333_v14 = vsel %vm331_vm10, %v1631_v10, %v332_v38  ;;  %vm330_vm12 = vcmp.lt.s32.totalorder %v329_v52, 2 }
 0x13c   :  { %v1375_v21 = vmin.u32 %v199_v31, %v2419_v6  ;;  %1492 = vmatpush3.bf16.msra.mxu1 %v1590_v62  ;;  %v336_v25 = vsel %vm334_vm11, %v335_v9, %v1633_v30  ;;  %v502_v63 = vadd.s32 %v501_v15, %v497_v40  ;;  %vm643_vm13 = vcmp.eq.s32.totalorder %v638_v24, 2 }
 0x13d   :  { %1493 = vmatprep.subr.bf16.mxu1 %v1591_v22  ;;  %v337_v17 = vsel %vm330_vm12, %v333_v14, %v336_v25  ;;  %vm640_vm14 = vcmp.eq.s32.totalorder %v638_v24, 0  ;;  %vm639_vm15 = vcmp.lt.s32.totalorder %v638_v24, 2  ;;  %vm328_vm2 = vweird.f32 %v1879_v43 }
 0x13e   :  { %v1635_v44 = vpop.eup %1634  ;;  %v201_v33 = vclz %v1375_v21  ;;  %v503_v50 = vadd.s32 536870912, %v502_v63  ;;  %vm637_vm5 = vweird.f32 %v1889_v57  ;;  %v338_v26 = vsel %vm328_vm2, nan, %v337_v17 }
 0x13f   :  { %v1637_v45 = vpop.eup %1636  ;;  %v644_v46 = vxor.u32 2147483648, %v1635_v44  ;;  %vm135_vm0 = vcmp.lt.s32.totalorder %v1877_v42, 0  ;;  %vm2446_vm4 = vcmp.le.f32.partialorder %v133_v19, 0.7853982  ;;  %v219_v62 = vsub.s32 4, %v2395_v54 }
 0x140   :  { %v641_v11 = vxor.u32 2147483648, %v1637_v45  ;;  %v1376_v32 = vadd.s32 4294967294, %v201_v33  ;;  %1494 = vmatpush3.bf16.msra.mxu1 %v1592_v60  ;;  %v2433_v37 = vshrl.u32 %v503_v50, 30  ;;  %vm443_vm8 = vcmp.le.f32.partialorder %v442_v59, 0.7853982 }
 0x141   :  { %v645_v23 = vsel %vm643_vm13, %v644_v46, %v1637_v45  ;;  %1495 = vmatprep.subr.bf16.mxu1 %v1593_v16  ;;  %v220_v19 = vsel %vm135_vm0, %v219_v62, %v2395_v54  ;;  %vm444_vm9 = vcmp.lt.s32.totalorder %v1887_v56, 0 }
 0x142   :  { %v642_v0 = vsel %vm640_vm14, %v1635_v44, %v641_v11  ;;  %vm1377_vm1 = vcmp.lt.s32.totalorder %v1376_v32, 0  ;;  %v505_v8 = vshll.u32 %v2433_v37, 30  ;;  %v222_v21 = vsel %vm2446_vm4, 0, %v220_v19 }
 0x143   :  { %v646_v2 = vsel %vm639_vm15, %v642_v0, %v645_v23  ;;  %v204_v13 = vsel %vm1377_vm1, 0, %v1376_v32  ;;  %v226_v16 = vand.u32 3, %v222_v21  ;;  %v528_v46 = vsub.s32 4, %v2433_v37 }
 0x144   :  { %v647_v51 = vsel %vm637_vm5, nan, %v646_v2  ;;  %v205_v10 = vsub.s32 32, %v204_v13  ;;  %v209_v39 = vsub.s32 4294967266, %v204_v13  ;;  %1496 = vmatpush3.bf16.msra.mxu1 %v1594_v18  ;;  %v206_v30 = vshll.u32 %v2419_v6, %v204_v13 }
 0x145   :  { %v752_v48 = vpack.c.bf16 %v647_v51, %v338_v26  ;;  %v506_v57 = vsub.s32 %v502_v63, %v505_v8  ;;  %vm231_vm7 = vcmp.eq.s32.totalorder %v226_v16, 2  ;;  %vm228_vm3 = vcmp.eq.s32.totalorder %v226_v16, 0  ;;  %v1598_v8 = vld [vmem:[#allocation7] ss:$8 sps:$4 sm:$0xff]  }
 0x146   :  { %v207_v43 = vshrl.u32 %v2358_v55, %v205_v10  ;;  %v210_v29 = vadd.s32 127, %v209_v39  ;;  %vm227_vm10 = vcmp.lt.s32.totalorder %v226_v16, 2  ;;  %v529_v18 = vsel %vm444_vm9, %v528_v46, %v2433_v37 }
 0x147   :  { %984 = vmatprep.mubr.bf16.mxu0 %v752_v48  ;;  %1173 = vmatmul.mubr.bf16.vlgmr.msra.gmra.mrb[4].mxu1 %v1595_v7  ;;  %v508_v53 = vsub.s32 0, %v506_v57  ;;  %v531_v17 = vsel %vm443_vm8, 0, %v529_v18  ;;  %vm225_vm14 = vweird.f32 %v1877_v42  ;;  %vm534_vm15 = vweird.f32 %v1887_v56 }
 0x148   :  { %v208_v58 = vor.u32 %v207_v43, %v206_v30  ;;  %v211_v41 = vshll.u32 %v210_v29, 23  ;;  %v535_v23 = vand.u32 3, %v531_v17  ;;  %v2528_v37 = vmov 0   ;;  %v1600_v30 = vld [vmem:[#allocation7 + $0x4] ss:$8 sps:$4 sm:$0xff]  }
 0x149   :  { %v1387_v35 = vmin.u32 %v508_v53, %v506_v57  ;;  %1309 = vmatprep.subr.bf16.mxu0 %v1600_v30  ;;  %v1601_v43 = vld [vmem:[#allocation7 + $0x10] ss:$8 sps:$4 sm:$0xff]   ;;  %v1603_v29 = vld [vmem:[#allocation7 + $0x14] ss:$8 sps:$4 sm:$0xff]   ;;  %v1610_v53 = vld [vmem:[#allocation7 + $0x40] ss:$8 sps:$4 sm:$0xff]  }
 0x14a   :  { %v212_v36 = vor.u32 4788187, %v211_v41  ;;  %v215_v12 = vcvt.s32.f32 %v208_v58  ;;  %vm540_vm11 = vcmp.eq.s32.totalorder %v535_v23, 2  ;;  %vm537_vm12 = vcmp.eq.s32.totalorder %v535_v23, 0  ;;  %v1604_v58 = vld [vmem:[#allocation7 + $0x20] ss:$8 sps:$4 sm:$0xff]  }
 0x14b   :  { %v510_v61 = vclz %v1387_v35  ;;  %vm536_vm13 = vcmp.lt.s32.totalorder %v535_v23, 2  ;;  %v1612_v41 = vld [vmem:[#allocation7 + $0x44] ss:$8 sps:$4 sm:$0xff]   ;;  %v1613_v35 = vld [vmem:[#allocation7 + $0x50] ss:$8 sps:$4 sm:$0xff]  }
 0x14c   :  { %v213_v5 = vand.u32 2147483647, %v212_v36  ;;  %v1615_v36 = vld [vmem:[#allocation7 + $0x54] ss:$8 sps:$4 sm:$0xff]   ;;  %v1217_v23 = vld [vmem:[%s2495_s8] sm:$0x3] }
 0x14d   :  { %v1388_v3 = vadd.s32 4294967294, %v510_v61  ;;  %s1716_s8 = scalar_lea.vmem %s1362_s16, 512 }
 0x14e   :  { %v216_v1 = vmul.f32 %v215_v12, %v213_v5  ;;  %v1618_v5 = vld [vmem:[#allocation7 + $0x64] ss:$8 sps:$4 sm:$0xff]   ;;  %v1616_v12 = vld [vmem:[#allocation7 + $0x60] ss:$8 sps:$4 sm:$0xff]   ;;  %p1717_p10 = scmp.ne.s32.totalorder %s1362_s16, %s1716_s8  ;;  %p1722_p12 = scmp.lt.s32.totalorder %s1716_s8, %s1716_s8 }
 0x14f   :  { %vm1389_vm6 = vcmp.lt.s32.totalorder %v1388_v3, 0 }
 0x150   :  { %v217_v4 = vxor.u32 2147483648, %v216_v1  ;;  %v513_v52 = vsel %vm1389_vm6, 0, %v1388_v3  ;;  %p1723_p13 = por %p1722_p12, %p1721_p11 }
 0x151   :  { %v514_v20 = vsub.s32 32, %v513_v52  ;;  %v518_v22 = vsub.s32 4294967266, %v513_v52  ;;  %v515_v38 = vshll.u32 %v506_v57, %v513_v52  ;;  %v1606_v57 = vld [vmem:[#allocation7 + $0x24] ss:$8 sps:$4 sm:$0xff]  }
 0x152   :  { %v218_v6 = vsel %vm135_vm0, %v217_v4, %v216_v1  ;;  %v1621_v1 = vld [vmem:[#allocation7 + $0x74] ss:$8 sps:$4 sm:$0xff]   ;;  %p1724_p0 = pnand %p1723_p13, %p1717_p10 }
 0x153   :  { %v221_v49 = vsel %vm2446_vm4, %v1877_v42, %v218_v6  ;;  %v516_v9 = vshrl.u32 %v2427_v34, %v514_v20  ;;  %v519_v31 = vadd.s32 127, %v518_v22  ;;  %v1609_v42 = vld [vmem:[#allocation7 + $0x34] ss:$8 sps:$4 sm:$0xff]   ;;  %v1619_v6 = vld [vmem:[#allocation7 + $0x70] ss:$8 sps:$4 sm:$0xff]  }
 0x154   :  { %1638 = vcosq.f32 %v221_v49 }
 0x155   :  { %1640 = vsinq.f32 %v221_v49  ;;  %v517_v47 = vor.u32 %v516_v9, %v515_v38  ;;  %v520_v24 = vshll.u32 %v519_v31, 23 }
 0x157   :  { %v521_v40 = vor.u32 4788187, %v520_v24  ;;  %v524_v15 = vcvt.s32.f32 %v517_v47 }
 0x159   :  { %v522_v60 = vand.u32 2147483647, %v521_v40 }
 0x15b   :  { %v525_v44 = vmul.f32 %v524_v15, %v522_v60  ;;  %v1437_v60 = vld [vmem:[%s2493_s6] ss:$0 sm:$0xff] }
 0x15d   :  { %v526_v63 = vxor.u32 2147483648, %v525_v44 }
 0x15e   :  { %v1639_v14 = vpop.eup %1638 }
 0x15f   :  { %v1641_v25 = vpop.eup %1640  ;;  %v232_v33 = vxor.u32 2147483648, %v1639_v14  ;;  %v527_v34 = vsel %vm444_vm9, %v526_v63, %v525_v44 }
 0x160   :  { %v229_v45 = vxor.u32 2147483648, %v1641_v25  ;;  %v530_v32 = vsel %vm443_vm8, %v1887_v56, %v527_v34  ;;  %v1607_v56 = vld [vmem:[#allocation7 + $0x30] ss:$8 sps:$4 sm:$0xff]  }
 0x161   :  { %v233_v54 = vsel %vm231_vm7, %v232_v33, %v1641_v25  ;;  %1642 = vcosq.f32 %v530_v32 }
 0x162   :  { %v230_v11 = vsel %vm228_vm3, %v1639_v14, %v229_v45  ;;  %1644 = vsinq.f32 %v530_v32 }
 0x163   :  { %v234_v50 = vsel %vm227_vm10, %v230_v11, %v233_v54 }
 0x164   :  { %v235_v10 = vsel %vm225_vm14, nan, %v234_v50 }
 0x16b   :  { %v1643_v0 = vpop.eup %1642 }
 0x16c   :  { %v1645_v59 = vpop.eup %1644  ;;  %v541_v2 = vxor.u32 2147483648, %v1643_v0 }
 0x16d   :  { %v538_v13 = vxor.u32 2147483648, %v1645_v59 }
 0x16e   :  { %v542_v7 = vsel %vm540_vm11, %v541_v2, %v1645_v59  ;;  %v1226_v59 = vrot.slane %v1217_v23, %v1865_v28 }
 0x16f   :  { %v539_v26 = vsel %vm537_vm12, %v1643_v0, %v538_v13  ;;  %v1222_v0 = vrot.slane %v1217_v23, %v1863_v27 }
 0x170   :  { %v543_v51 = vsel %vm536_vm13, %v539_v26, %v542_v7 }
 0x171   :  { %v544_v39 = vsel %vm534_vm15, nan, %v543_v51 }
 0x172   :  { %v751_v48 = vpack.c.bf16 %v544_v39, %v235_v10 }
 0x174   :  { %985 = vmatmul.mubr.bf16.vlgmr.msra.gmra.mrb[0].mxu0 %v751_v48 }
 0x175   :  { %1341 = vmatprep.mubr.bf16.mxu0 %v2528_v37  ;;  %1310 = vmatpush1.bf16.msra.mxu0 %v1598_v8 }
 0x176   :  { %1311 = vmatprep.subr.bf16.mxu0 %v1603_v29 }
 0x179   :  { %1312 = vmatpush1.bf16.msra.mxu0 %v1601_v43 }
 0x17a   :  { %1313 = vmatprep.subr.bf16.mxu0 %v1606_v57 }
 0x17d   :  { %1314 = vmatpush1.bf16.msra.mxu0 %v1604_v58 }
 0x17e   :  { %1315 = vmatprep.subr.bf16.mxu0 %v1609_v42 }
 0x181   :  { %1316 = vmatpush1.bf16.msra.mxu0 %v1607_v56 }
 0x182   :  { %1317 = vmatprep.subr.bf16.mxu0 %v1612_v41 }
 0x185   :  { %1318 = vmatpush1.bf16.msra.mxu0 %v1610_v53 }
 0x186   :  { %1319 = vmatprep.subr.bf16.mxu0 %v1615_v36 }
 0x189   :  { %1320 = vmatpush1.bf16.msra.mxu0 %v1613_v35 }
 0x18a   :  { %1321 = vmatprep.subr.bf16.mxu0 %v1618_v5 }
 0x18d   :  { %1322 = vmatpush1.bf16.msra.mxu0 %v1616_v12 }
 0x18e   :  { %1323 = vmatprep.subr.bf16.mxu0 %v1621_v1 }
 0x191   :  { %1324 = vmatpush1.bf16.msra.mxu0 %v1619_v6 }
 0x1fa   :  { %v1027_v61 = vpop.f32.mrb[0].mxu1 }
 0x1fb   :  { %v1513_v3 = vpop.f32.mrb[1].mxu1 }
 0x1fc   :  { %v1030_v4 = vpop.f32.mrb[2].mxu1 }
 0x1fd   :  { %v1514_v55 = vpop.f32.mrb[3].mxu1 }
 0x21a   :  { %v1497_v62 = vpop.f32.mrb[4].mxu1 }
 0x21b   :  { %v1498_v52 = vpop.f32.mrb[5].mxu1 }
 0x21c   :  { %v1499_v49 = vadd.f32 %v1498_v52, %v1497_v62  ;;  %v1500_v20 = vpop.f32.mrb[6].mxu1 }
 0x21d   :  { %v1501_v22 = vpop.f32.mrb[7].mxu1 }
 0x21e   :  { %v1502_v38 = vadd.f32 %v1501_v22, %v1500_v20 }
 0x247   :  { %v1470_v9 = vpop.f32.mrb[0].mxu0 }
 0x248   :  { %v1471_v31 = vpop.f32.mrb[1].mxu0 }
 0x249   :  { %v1472_v19 = vadd.f32 %v1471_v31, %v1470_v9  ;;  %v1473_v47 = vpop.f32.mrb[2].mxu0 }
 0x24a   :  { %v1474_v24 = vpop.f32.mrb[3].mxu0 }
 0x24b   :  { %v1028_v21 = vadd.f32 %v1472_v19, %v1027_v61  ;;  %v1475_v40 = vadd.f32 %v1474_v24, %v1473_v47 }
 0x24d   :  { %v1031_v15 = vadd.f32 %v1475_v40, %v1030_v4  ;;  %v1175_v16 = vadd.f32 %v1499_v49, %v1028_v21 }
 0x24f   :  { %v1188_v44 = vadd.f32 %v1437_v60, %v1175_v16  ;;  %v1178_v14 = vadd.f32 %v1502_v38, %v1031_v15 }
 0x251   :  { %v1190_v25 = vmul.f32 0.5, %v1188_v44  ;;  %v1189_v33 = vadd.f32 %v1437_v60, %v1178_v14 }
 0x253   :  { %1646 = vtanh.f32 %v1190_v25  ;;  %v1191_v63 = vmul.f32 0.5, %v1189_v33 }
 0x255   :  { %1648 = vtanh.f32 %v1191_v63 }
 0x25d   :  { %v1647_v45 = vpop.eup %1646 }
 0x25e   :  { %v1194_v54 = vmul.f32 0.5, %v1647_v45 }
 0x25f   :  { %v1649_v34 = vpop.eup %1648 }
 0x260   :  { %v1196_v46 = vadd.f32 0.5, %v1194_v54  ;;  %v1195_v11 = vmul.f32 0.5, %v1649_v34 }
 0x262   :  { %v1197_v32 = vadd.f32 0.5, %v1195_v11  ;;  %v1198_v50 = vmul.f32 %v1196_v46, %v1188_v44 }
 0x264   :  { %v1199_v18 = vmul.f32 %v1197_v32, %v1189_v33 }
 0x266   :  { %v1200_v17 = vpack.c.bf16 %v1199_v18, %v1198_v50 }
 0x268   :  { %1342 = vmatmul.mubr.bf16.vlgmr.msra.gmra.mrb[4].mxu0 %v1200_v17 }
 0x33b   :  { %v1343_v2 = vpop.f32.mrb[4].mxu0 }
 0x33c   :  { %v1344_v13 = vadd.f32 %v1343_v2, %v1222_v0  ;;  %v1345_v7 = vpop.f32.mrb[5].mxu0 }
 0x33d   :  { %v1346_v26 = vadd.f32 %v1345_v7, %v1226_v59  ;;  %v1347_v51 = vpop.f32.mrb[6].mxu0 }
 0x33e   :  { %1352 = vst [vmem:[#allocation8] sm:$0xff] %v1344_v13  ;;  %v1348_v10 = vadd.f32 %v1347_v51, %v1222_v0  ;;  %v1349_v39 = vpop.f32.mrb[7].mxu0 }
 0x33f   :  { %1353 = vst [vmem:[#allocation8 + $0x8] sm:$0xff] %v1346_v26  ;;  %v1350_v48 = vadd.f32 %v1349_v39, %v1226_v59 }
 0x340   :  { %1354 = vst [vmem:[#allocation8 + $0x10] sm:$0xff] %v1348_v10 }
 0x341   :  { %1355 = vst [vmem:[#allocation8 + $0x18] sm:$0xff] %v1350_v48 }
 0x342   :  { %1727 = shalt.err (!%p1724_p0)
}
 0x343   :  { %s1728_s19 = scalar_lea.hbm %s2496_s9, 512 }
 0x344   :  { %p1729_p1 = scmp.ne.s32.totalorder %s2496_s9, %s1728_s19  ;;  %p1732_p2 = scmp.lt.u32.totalorder %s1728_s19, %s2496_s9 }
 0x346   :  { %p1734_p3 = pnand %p1732_p2, %p1729_p1 }
 0x348   :  { %1737 = shalt.err (!%p1734_p3)
}
 0x349   :  { %s1761_s4 = smov 256   ;;  %s1762_s12 = smov 16  }
 0x34a   :  { %1367 = dma.vmem_to_hbm [thread:$0]  %s1362_s16, 512, %s2496_s9, [#allocation4], %s1761_s4, %s1761_s4, %s1762_s12  }
 0x34b   :  { %1742 = dma.done.wait [#allocation4], 512  }
 0x34c   :  { %1743 = vsyncadd [#allocation4], 4294966784 }
 0x34d   :  { %1371 = vsyncpa [#allocation3], 1 }
 0x34e   :  { %1372 = vsyncpa [#allocation6], 1 }
 0x34f   :  { %1373 = vsyncpa [#allocation4], 1 }

</bundles_post_ra>
